<compile_context>
chip_gen: v7x
topology: tpu7x:2x2x1
jax: 0.10.0
libtpu: 0.0.40
codegen_flags: <defaults>
</compile_context>

<pallas_src>
import functools

import jax
import jax.numpy as jnp
import numpy as np
from jax.experimental import pallas as pl
from jax.experimental.pallas import tpu as pltpu


def _round_up(x, m):
    return ((x + m - 1) // m) * m


# ----------------------------------------------------------------------------
# Fused kernel: o = SelfAttention^L(x + Linear(x)), all VMEM-resident.
#
# Shapes (Cp = channel dim padded to a multiple of 128, BN = batch * n_pix):
#   x_ref, o_ref : (BN, Cp)
#   lw_ref       : (Cp, Cp)      lb_ref       : (1, Cp)
#   wq/wk/wv_ref : (L, Cp, Cp)   bq/bk/bv_ref : (L, 1, Cp)
#   gamma_ref    : (L,) f32 in SMEM
# ----------------------------------------------------------------------------
def attention_block_kernel(x_ref, lw_ref, lb_ref,
                           wq_ref, bq_ref, wk_ref, bk_ref, wv_ref, bv_ref,
                           gamma_ref, o_ref, *, num_layers, batch, n_pix):
    contract_last = (((1,), (1,)), ((), ()))   # q . k^T without explicit .T

    # p + Linear(p): one lane-dense 128-row MXU pass over all batch rows.
    x = x_ref[...]
    o_ref[...] = (x
                  + jnp.dot(x, lw_ref[...], preferred_element_type=jnp.float32)
                  + lb_ref[...])

    for l in range(num_layers):                       # static unroll (L small)
        x = o_ref[...]                                # (BN, Cp), stays in VMEM
        # Full-slab q/k/v projections.  Padded weight columns / bias lanes are
        # zero, so padded lanes of q/k/v stay exactly zero.
        q = jnp.dot(x, wq_ref[l], preferred_element_type=jnp.float32) + bq_ref[l]
        k = jnp.dot(x, wk_ref[l], preferred_element_type=jnp.float32) + bk_ref[l]
        v = jnp.dot(x, wv_ref[l], preferred_element_type=jnp.float32) + bv_ref[l]
        gamma = gamma_ref[l]

        for b in range(batch):                        # static unroll (B small)
            lo = b * n_pix                            # sublane-aligned slice
            qb = q[lo:lo + n_pix]
            kb = k[lo:lo + n_pix]
            vb = v[lo:lo + n_pix]
            xb = x[lo:lo + n_pix]

            # energy[i, j] = q_i . k_j   (128-wide contraction; zero pad lanes)
            energy = jax.lax.dot_general(qb, kb, contract_last,
                                         preferred_element_type=jnp.float32)
            energy = energy - jnp.max(energy, axis=-1, keepdims=True)
            p = jnp.exp(energy)
            attn = p * pl.reciprocal(jnp.sum(p, axis=-1, keepdims=True),
                                     approx=True)
            # out[i, c] = sum_j attn[i, j] v[j, c]  (== bmm(proj_v, attn^T))
            out_b = jnp.dot(attn, vb, preferred_element_type=jnp.float32)
            o_ref[lo:lo + n_pix, :] = gamma * out_b + xb
    # TODO(synk): for N >= ~2K, tile the key dimension with an online
    # (flash-style) softmax instead of materializing the (N, N) energy in VMEM
    # (required on v7x's 64 MiB VMEM, advisable on v6e's 32 MiB scoped limit).


# ----------------------------------------------------------------------------
# Wrapper: NCHW <-> padded (B*N, Cp) plumbing around one pallas_call.
# ----------------------------------------------------------------------------
def attention_block_forward(x_nchw, kparams):
    b, C, w, h = x_nchw.shape
    N = w * h
    BN = b * N
    Cp = kparams["lin_w"].shape[0]
    L = kparams["wq"].shape[0]

    # NCHW -> (B*N, C) -> zero-pad channels to Cp (lane-dense layout).
    x_flat = jnp.transpose(x_nchw, (0, 2, 3, 1)).reshape(BN, C)
    x_pad = jnp.pad(x_flat, ((0, 0), (0, Cp - C)))

    kernel = functools.partial(attention_block_kernel,
                               num_layers=L, batch=b, n_pix=N)
    vmem = pl.BlockSpec(memory_space=pltpu.MemorySpace.VMEM)
    smem = pl.BlockSpec(memory_space=pltpu.MemorySpace.SMEM)

    out_pad = pl.pallas_call(
        kernel,
        out_shape=jax.ShapeDtypeStruct((BN, Cp), jnp.float32),
        in_specs=[vmem] * 9 + [smem],
        out_specs=vmem,
        # TODO(synk): on v7x (2 TensorCores) a parallel batch axis would let
        # Mosaic use both cores; at B=2, N=64 the fused single-step kernel
        # (no per-step overhead, full 128-row MXU passes) is the better trade.
    )(x_pad, kparams["lin_w"], kparams["lin_b"],
      kparams["wq"], kparams["bq"], kparams["wk"], kparams["bk"],
      kparams["wv"], kparams["bv"], kparams["gammas"])

    # Un-pad and restore NCHW.
    out = out_pad[:, :C].reshape(b, w, h, C)
    return jnp.transpose(out, (0, 3, 1, 2))


# ----------------------------------------------------------------------------
# Pure-JAX reference (mirrors the PyTorch forward exactly)
# ----------------------------------------------------------------------------
def attention_block_reference(x_nchw, params):
    b, C, w, h = x_nchw.shape
    N = w * h
    x_bnc = jnp.transpose(x_nchw, (0, 2, 3, 1)).reshape(b, N, C)
    x_bnc = x_bnc + (x_bnc @ params["lin_w_t"] + params["lin_b"])
    for layer in params["layers"]:
        q = x_bnc @ layer["wq_t"] + layer["bq"]          # (b, N, Cq)
        k = x_bnc @ layer["wk_t"] + layer["bk"]          # (b, N, Cq)
        v = x_bnc @ layer["wv_t"] + layer["bv"]          # (b, N, C)
        energy = jnp.einsum("bic,bjc->bij", q, k)
        attn = jax.nn.softmax(energy, axis=-1)
        out = jnp.einsum("bij,bjc->bic", attn, v)
        x_bnc = layer["gamma"] * out + x_bnc
    return jnp.transpose(x_bnc.reshape(b, w, h, C), (0, 3, 1, 2))


# ----------------------------------------------------------------------------
# Deterministic parameter construction + one-time lane padding for the kernel
# ----------------------------------------------------------------------------
def make_params(key, in_dim, num_layer):
    C = in_dim
    Cq = C // 8
    keys = jax.random.split(key, 2 + num_layer)
    # nn.Linear(in_dim, out_dim): weight (out, in) -> stored transposed (in, out)
    lin_w_t = 0.1 * jax.random.normal(keys[0], (C, C), jnp.float32)
    lin_b = 0.1 * jax.random.normal(keys[1], (1, C), jnp.float32)
    layers = []
    for l in range(num_layer):
        kq, kk, kv, kb = jax.random.split(keys[2 + l], 4)
        # Conv2d 1x1 weights (out_ch, in_ch, 1, 1) -> stored as (in_ch, out_ch)
        layers.append(dict(
            wq_t=0.1 * jax.random.normal(kq, (C, Cq), jnp.float32),
            bq=0.1 * jax.random.normal(kb, (1, Cq), jnp.float32),
            wk_t=0.1 * jax.random.normal(kk, (C, Cq), jnp.float32),
            bk=0.05 * jax.random.normal(kb, (1, Cq), jnp.float32),
            wv_t=0.1 * jax.random.normal(kv, (C, C), jnp.float32),
            bv=0.1 * jax.random.normal(kb, (1, C), jnp.float32),
            # nn.Parameter(torch.zeros(1)) in the module; nonzero here so the
            # attention path actually contributes in this synthetic test.
            gamma=jnp.float32(0.25),
        ))
    return dict(lin_w_t=lin_w_t, lin_b=lin_b, layers=layers)


def prepare_kernel_params(params):
    """Zero-pad + stack parameters into the lane-dense layout the kernel uses."""
    C = params["lin_w_t"].shape[0]
    Cq = params["layers"][0]["wq_t"].shape[1]
    Cp = max(128, _round_up(C, 128))

    def pad_w(m, rows, cols):
        return jnp.zeros((Cp, Cp), jnp.float32).at[:rows, :cols].set(m)

    def pad_b(v, cols):
        return jnp.zeros((1, Cp), jnp.float32).at[:, :cols].set(v)

    lyr = params["layers"]
    return dict(
        lin_w=pad_w(params["lin_w_t"], C, C),
        lin_b=pad_b(params["lin_b"], C),
        wq=jnp.stack([pad_w(ly["wq_t"], C, Cq) for ly in lyr]),
        bq=jnp.stack([pad_b(ly["bq"], Cq) for ly in lyr]),
        wk=jnp.stack([pad_w(ly["wk_t"], C, Cq) for ly in lyr]),
        bk=jnp.stack([pad_b(ly["bk"], Cq) for ly in lyr]),
        wv=jnp.stack([pad_w(ly["wv_t"], C, C) for ly in lyr]),
        bv=jnp.stack([pad_b(ly["bv"], C) for ly in lyr]),
        gammas=jnp.stack([ly["gamma"] for ly in lyr]).astype(jnp.float32),
    )


if __name__ == "__main__":
    # AttentionBlock(in_dim=32, out_dim=32, num_layer=2); input (2, 32, 8, 8)
    B, C, W, H = 2, 32, 8, 8
    NUM_LAYER = 2

    key = jax.random.PRNGKey(0)
    kx, kp = jax.random.split(key)
    x = jax.random.normal(kx, (B, C, W, H), jnp.float32)
    params = make_params(kp, C, NUM_LAYER)
    kparams = prepare_kernel_params(params)

    fwd = jax.jit(attention_block_forward)
    out = jax.block_until_ready(fwd(x, kparams))

    ref = attention_block_reference(x, params)
    # approx=True reciprocal in the softmax denominator -> slightly relaxed tol.
    np.testing.assert_allclose(np.asarray(out), np.asarray(ref),
                               rtol=2e-3, atol=2e-3)
    assert out.shape == (B, C, W, H)

    print("KERNEL_OK")
</pallas_src>

<mosaic_0001>
module attributes {stable_mosaic.version = 11 : i64} {
  func.func @attention_block_kernel(%arg0: memref<128x128xf32, #tpu.memory_space<vmem>>, %arg1: memref<128x128xf32, #tpu.memory_space<vmem>>, %arg2: memref<1x128xf32, #tpu.memory_space<vmem>>, %arg3: memref<2x128x128xf32, #tpu.memory_space<vmem>>, %arg4: memref<2x1x128xf32, #tpu.memory_space<vmem>>, %arg5: memref<2x128x128xf32, #tpu.memory_space<vmem>>, %arg6: memref<2x1x128xf32, #tpu.memory_space<vmem>>, %arg7: memref<2x128x128xf32, #tpu.memory_space<vmem>>, %arg8: memref<2x1x128xf32, #tpu.memory_space<vmem>>, %arg9: memref<2xf32, #tpu.memory_space<smem>>, %arg10: memref<128x128xf32, #tpu.memory_space<vmem>>) attributes {dimension_semantics = [], scalar_prefetch = 0 : i64, scratch_operands = 0 : i64, tpu.core_type = #tpu.core_type<tc>} {
    %c0 = arith.constant 0 : index
    %c0_0 = arith.constant 0 : index
    %0 = vector.load %arg0[%c0, %c0_0] : memref<128x128xf32, #tpu.memory_space<vmem>>, vector<128x128xf32>
    %c0_1 = arith.constant 0 : index
    %c0_2 = arith.constant 0 : index
    %1 = vector.load %arg1[%c0_1, %c0_2] : memref<128x128xf32, #tpu.memory_space<vmem>>, vector<128x128xf32>
    %cst = arith.constant dense<0.000000e+00> : vector<128x128xf32>
    %2 = tpu.matmul %0, %1, %cst {dimension_numbers = #tpu.dot_dimension_numbers<[1], [0], [0], [1], [0, 0, 1, 1], [], []>} : vector<128x128xf32>, vector<128x128xf32>, vector<128x128xf32> -> vector<128x128xf32>
    %3 = arith.addf %0, %2 : vector<128x128xf32>
    %c0_3 = arith.constant 0 : index
    %c0_4 = arith.constant 0 : index
    %4 = vector.load %arg2[%c0_3, %c0_4] : memref<1x128xf32, #tpu.memory_space<vmem>>, vector<1x128xf32>
    %5 = vector.broadcast %4 : vector<1x128xf32> to vector<128x128xf32>
    %6 = arith.addf %3, %5 : vector<128x128xf32>
    %c0_5 = arith.constant 0 : index
    %c0_6 = arith.constant 0 : index
    %7 = vector.load %arg10[%c0_5, %c0_6] : memref<128x128xf32, #tpu.memory_space<vmem>>, vector<128x128xf32>
    tpu.vector_store %arg10[%c0_5, %c0_6], %6 {strides = array<i32>} : memref<128x128xf32, #tpu.memory_space<vmem>>, vector<128x128xf32>,
    %c0_7 = arith.constant 0 : index
    %c0_8 = arith.constant 0 : index
    %8 = vector.load %arg10[%c0_7, %c0_8] : memref<128x128xf32, #tpu.memory_space<vmem>>, vector<128x128xf32>
    %c0_9 = arith.constant 0 : index
    %c0_10 = arith.constant 0 : index
    %c0_11 = arith.constant 0 : index
    %9 = vector.load %arg3[%c0_9, %c0_10, %c0_11] : memref<2x128x128xf32, #tpu.memory_space<vmem>>, vector<1x128x128xf32>
    %10 = vector.shape_cast %9 : vector<1x128x128xf32> to vector<128x128xf32>
    %cst_12 = arith.constant dense<0.000000e+00> : vector<128x128xf32>
    %11 = tpu.matmul %8, %10, %cst_12 {dimension_numbers = #tpu.dot_dimension_numbers<[1], [0], [0], [1], [0, 0, 1, 1], [], []>} : vector<128x128xf32>, vector<128x128xf32>, vector<128x128xf32> -> vector<128x128xf32>
    %c0_13 = arith.constant 0 : index
    %c0_14 = arith.constant 0 : index
    %c0_15 = arith.constant 0 : index
    %12 = vector.load %arg4[%c0_13, %c0_14, %c0_15] : memref<2x1x128xf32, #tpu.memory_space<vmem>>, vector<1x1x128xf32>
    %13 = vector.shape_cast %12 : vector<1x1x128xf32> to vector<1x128xf32>
    %14 = vector.broadcast %13 : vector<1x128xf32> to vector<128x128xf32>
    %15 = arith.addf %11, %14 : vector<128x128xf32>
    %c0_16 = arith.constant 0 : index
    %c0_17 = arith.constant 0 : index
    %c0_18 = arith.constant 0 : index
    %16 = vector.load %arg5[%c0_16, %c0_17, %c0_18] : memref<2x128x128xf32, #tpu.memory_space<vmem>>, vector<1x128x128xf32>
    %17 = vector.shape_cast %16 : vector<1x128x128xf32> to vector<128x128xf32>
    %cst_19 = arith.constant dense<0.000000e+00> : vector<128x128xf32>
    %18 = tpu.matmul %8, %17, %cst_19 {dimension_numbers = #tpu.dot_dimension_numbers<[1], [0], [0], [1], [0, 0, 1, 1], [], []>} : vector<128x128xf32>, vector<128x128xf32>, vector<128x128xf32> -> vector<128x128xf32>
    %c0_20 = arith.constant 0 : index
    %c0_21 = arith.constant 0 : index
    %c0_22 = arith.constant 0 : index
    %19 = vector.load %arg6[%c0_20, %c0_21, %c0_22] : memref<2x1x128xf32, #tpu.memory_space<vmem>>, vector<1x1x128xf32>
    %20 = vector.shape_cast %19 : vector<1x1x128xf32> to vector<1x128xf32>
    %21 = vector.broadcast %20 : vector<1x128xf32> to vector<128x128xf32>
    %22 = arith.addf %18, %21 : vector<128x128xf32>
    %c0_23 = arith.constant 0 : index
    %c0_24 = arith.constant 0 : index
    %c0_25 = arith.constant 0 : index
    %23 = vector.load %arg7[%c0_23, %c0_24, %c0_25] : memref<2x128x128xf32, #tpu.memory_space<vmem>>, vector<1x128x128xf32>
    %24 = vector.shape_cast %23 : vector<1x128x128xf32> to vector<128x128xf32>
    %cst_26 = arith.constant dense<0.000000e+00> : vector<128x128xf32>
    %25 = tpu.matmul %8, %24, %cst_26 {dimension_numbers = #tpu.dot_dimension_numbers<[1], [0], [0], [1], [0, 0, 1, 1], [], []>} : vector<128x128xf32>, vector<128x128xf32>, vector<128x128xf32> -> vector<128x128xf32>
    %c0_27 = arith.constant 0 : index
    %c0_28 = arith.constant 0 : index
    %c0_29 = arith.constant 0 : index
    %26 = vector.load %arg8[%c0_27, %c0_28, %c0_29] : memref<2x1x128xf32, #tpu.memory_space<vmem>>, vector<1x1x128xf32>
    %27 = vector.shape_cast %26 : vector<1x1x128xf32> to vector<1x128xf32>
    %28 = vector.broadcast %27 : vector<1x128xf32> to vector<128x128xf32>
    %29 = arith.addf %25, %28 : vector<128x128xf32>
    %c0_30 = arith.constant 0 : index
    %30 = memref.load %arg9[%c0_30] : memref<2xf32, #tpu.memory_space<smem>>
    %31 = vector.extract_strided_slice %15 {offsets = [0, 0], sizes = [64, 128], strides = [1, 1]} : vector<128x128xf32> to vector<64x128xf32>
    %32 = vector.extract_strided_slice %22 {offsets = [0, 0], sizes = [64, 128], strides = [1, 1]} : vector<128x128xf32> to vector<64x128xf32>
    %33 = vector.extract_strided_slice %29 {offsets = [0, 0], sizes = [64, 128], strides = [1, 1]} : vector<128x128xf32> to vector<64x128xf32>
    %34 = vector.extract_strided_slice %8 {offsets = [0, 0], sizes = [64, 128], strides = [1, 1]} : vector<128x128xf32> to vector<64x128xf32>
    %cst_31 = arith.constant dense<0.000000e+00> : vector<64x64xf32>
    %35 = tpu.matmul %31, %32, %cst_31 {dimension_numbers = #tpu.dot_dimension_numbers<[1], [1], [0], [0], [0, 0, 1, 0], [], []>} : vector<64x128xf32>, vector<64x128xf32>, vector<64x64xf32> -> vector<64x64xf32>
    %cst_32 = arith.constant dense<0xFF800000> : vector<64xf32>
    %36 = vector.multi_reduction <maximumf>, %35, %cst_32 [1] : vector<64x64xf32> to vector<64xf32>
    %37 = vector.shape_cast %36 : vector<64xf32> to vector<64x1xf32>
    %38 = vector.broadcast %37 : vector<64x1xf32> to vector<64x64xf32>
    %39 = arith.subf %35, %38 : vector<64x64xf32>
    %40 = math.exp %39 : vector<64x64xf32>
    %cst_33 = arith.constant dense<0.000000e+00> : vector<64xf32>
    %41 = vector.multi_reduction <add>, %40, %cst_33 [1] : vector<64x64xf32> to vector<64xf32>
    %42 = vector.shape_cast %41 : vector<64xf32> to vector<64x1xf32>
    %43 = tpu.reciprocal %42 {approx = true} : vector<64x1xf32> -> vector<64x1xf32>
    %44 = vector.broadcast %43 : vector<64x1xf32> to vector<64x64xf32>
    %45 = arith.mulf %40, %44 : vector<64x64xf32>
    %cst_34 = arith.constant dense<0.000000e+00> : vector<64x128xf32>
    %46 = tpu.matmul %45, %33, %cst_34 {dimension_numbers = #tpu.dot_dimension_numbers<[1], [0], [0], [1], [0, 0, 1, 1], [], []>} : vector<64x64xf32>, vector<64x128xf32>, vector<64x128xf32> -> vector<64x128xf32>
    %47 = vector.broadcast %30 : f32 to vector<64x128xf32>
    %48 = arith.mulf %47, %46 : vector<64x128xf32>
    %49 = arith.addf %48, %34 : vector<64x128xf32>
    %c0_35 = arith.constant 0 : index
    %c0_36 = arith.constant 0 : index
    %50 = vector.load %arg10[%c0_35, %c0_36] : memref<128x128xf32, #tpu.memory_space<vmem>>, vector<64x128xf32>
    tpu.vector_store %arg10[%c0_35, %c0_36], %49 {strides = array<i32>} : memref<128x128xf32, #tpu.memory_space<vmem>>, vector<64x128xf32>,
    %51 = vector.extract_strided_slice %15 {offsets = [64, 0], sizes = [64, 128], strides = [1, 1]} : vector<128x128xf32> to vector<64x128xf32>
    %52 = vector.extract_strided_slice %22 {offsets = [64, 0], sizes = [64, 128], strides = [1, 1]} : vector<128x128xf32> to vector<64x128xf32>
    %53 = vector.extract_strided_slice %29 {offsets = [64, 0], sizes = [64, 128], strides = [1, 1]} : vector<128x128xf32> to vector<64x128xf32>
    %54 = vector.extract_strided_slice %8 {offsets = [64, 0], sizes = [64, 128], strides = [1, 1]} : vector<128x128xf32> to vector<64x128xf32>
    %cst_37 = arith.constant dense<0.000000e+00> : vector<64x64xf32>
    %55 = tpu.matmul %51, %52, %cst_37 {dimension_numbers = #tpu.dot_dimension_numbers<[1], [1], [0], [0], [0, 0, 1, 0], [], []>} : vector<64x128xf32>, vector<64x128xf32>, vector<64x64xf32> -> vector<64x64xf32>
    %cst_38 = arith.constant dense<0xFF800000> : vector<64xf32>
    %56 = vector.multi_reduction <maximumf>, %55, %cst_38 [1] : vector<64x64xf32> to vector<64xf32>
    %57 = vector.shape_cast %56 : vector<64xf32> to vector<64x1xf32>
    %58 = vector.broadcast %57 : vector<64x1xf32> to vector<64x64xf32>
    %59 = arith.subf %55, %58 : vector<64x64xf32>
    %60 = math.exp %59 : vector<64x64xf32>
    %cst_39 = arith.constant dense<0.000000e+00> : vector<64xf32>
    %61 = vector.multi_reduction <add>, %60, %cst_39 [1] : vector<64x64xf32> to vector<64xf32>
    %62 = vector.shape_cast %61 : vector<64xf32> to vector<64x1xf32>
    %63 = tpu.reciprocal %62 {approx = true} : vector<64x1xf32> -> vector<64x1xf32>
    %64 = vector.broadcast %63 : vector<64x1xf32> to vector<64x64xf32>
    %65 = arith.mulf %60, %64 : vector<64x64xf32>
    %cst_40 = arith.constant dense<0.000000e+00> : vector<64x128xf32>
    %66 = tpu.matmul %65, %53, %cst_40 {dimension_numbers = #tpu.dot_dimension_numbers<[1], [0], [0], [1], [0, 0, 1, 1], [], []>} : vector<64x64xf32>, vector<64x128xf32>, vector<64x128xf32> -> vector<64x128xf32>
    %67 = vector.broadcast %30 : f32 to vector<64x128xf32>
    %68 = arith.mulf %67, %66 : vector<64x128xf32>
    %69 = arith.addf %68, %54 : vector<64x128xf32>
    %c64 = arith.constant 64 : index
    %c0_41 = arith.constant 0 : index
    %70 = vector.load %arg10[%c64, %c0_41] : memref<128x128xf32, #tpu.memory_space<vmem>>, vector<64x128xf32>
    tpu.vector_store %arg10[%c64, %c0_41], %69 {strides = array<i32>} : memref<128x128xf32, #tpu.memory_space<vmem>>, vector<64x128xf32>,
    %c0_42 = arith.constant 0 : index
    %c0_43 = arith.constant 0 : index
    %71 = vector.load %arg10[%c0_42, %c0_43] : memref<128x128xf32, #tpu.memory_space<vmem>>, vector<128x128xf32>
    %c1 = arith.constant 1 : index
    %c0_44 = arith.constant 0 : index
    %c0_45 = arith.constant 0 : index
    %72 = vector.load %arg3[%c1, %c0_44, %c0_45] : memref<2x128x128xf32, #tpu.memory_space<vmem>>, vector<1x128x128xf32>
    %73 = vector.shape_cast %72 : vector<1x128x128xf32> to vector<128x128xf32>
    %cst_46 = arith.constant dense<0.000000e+00> : vector<128x128xf32>
    %74 = tpu.matmul %71, %73, %cst_46 {dimension_numbers = #tpu.dot_dimension_numbers<[1], [0], [0], [1], [0, 0, 1, 1], [], []>} : vector<128x128xf32>, vector<128x128xf32>, vector<128x128xf32> -> vector<128x128xf32>
    %c1_47 = arith.constant 1 : index
    %c0_48 = arith.constant 0 : index
    %c0_49 = arith.constant 0 : index
    %75 = vector.load %arg4[%c1_47, %c0_48, %c0_49] : memref<2x1x128xf32, #tpu.memory_space<vmem>>, vector<1x1x128xf32>
    %76 = vector.shape_cast %75 : vector<1x1x128xf32> to vector<1x128xf32>
    %77 = vector.broadcast %76 : vector<1x128xf32> to vector<128x128xf32>
    %78 = arith.addf %74, %77 : vector<128x128xf32>
    %c1_50 = arith.constant 1 : index
    %c0_51 = arith.constant 0 : index
    %c0_52 = arith.constant 0 : index
    %79 = vector.load %arg5[%c1_50, %c0_51, %c0_52] : memref<2x128x128xf32, #tpu.memory_space<vmem>>, vector<1x128x128xf32>
    %80 = vector.shape_cast %79 : vector<1x128x128xf32> to vector<128x128xf32>
    %cst_53 = arith.constant dense<0.000000e+00> : vector<128x128xf32>
    %81 = tpu.matmul %71, %80, %cst_53 {dimension_numbers = #tpu.dot_dimension_numbers<[1], [0], [0], [1], [0, 0, 1, 1], [], []>} : vector<128x128xf32>, vector<128x128xf32>, vector<128x128xf32> -> vector<128x128xf32>
    %c1_54 = arith.constant 1 : index
    %c0_55 = arith.constant 0 : index
    %c0_56 = arith.constant 0 : index
    %82 = vector.load %arg6[%c1_54, %c0_55, %c0_56] : memref<2x1x128xf32, #tpu.memory_space<vmem>>, vector<1x1x128xf32>
    %83 = vector.shape_cast %82 : vector<1x1x128xf32> to vector<1x128xf32>
    %84 = vector.broadcast %83 : vector<1x128xf32> to vector<128x128xf32>
    %85 = arith.addf %81, %84 : vector<128x128xf32>
    %c1_57 = arith.constant 1 : index
    %c0_58 = arith.constant 0 : index
    %c0_59 = arith.constant 0 : index
    %86 = vector.load %arg7[%c1_57, %c0_58, %c0_59] : memref<2x128x128xf32, #tpu.memory_space<vmem>>, vector<1x128x128xf32>
    %87 = vector.shape_cast %86 : vector<1x128x128xf32> to vector<128x128xf32>
    %cst_60 = arith.constant dense<0.000000e+00> : vector<128x128xf32>
    %88 = tpu.matmul %71, %87, %cst_60 {dimension_numbers = #tpu.dot_dimension_numbers<[1], [0], [0], [1], [0, 0, 1, 1], [], []>} : vector<128x128xf32>, vector<128x128xf32>, vector<128x128xf32> -> vector<128x128xf32>
    %c1_61 = arith.constant 1 : index
    %c0_62 = arith.constant 0 : index
    %c0_63 = arith.constant 0 : index
    %89 = vector.load %arg8[%c1_61, %c0_62, %c0_63] : memref<2x1x128xf32, #tpu.memory_space<vmem>>, vector<1x1x128xf32>
    %90 = vector.shape_cast %89 : vector<1x1x128xf32> to vector<1x128xf32>
    %91 = vector.broadcast %90 : vector<1x128xf32> to vector<128x128xf32>
    %92 = arith.addf %88, %91 : vector<128x128xf32>
    %c1_64 = arith.constant 1 : index
    %93 = memref.load %arg9[%c1_64] : memref<2xf32, #tpu.memory_space<smem>>
    %94 = vector.extract_strided_slice %78 {offsets = [0, 0], sizes = [64, 128], strides = [1, 1]} : vector<128x128xf32> to vector<64x128xf32>
    %95 = vector.extract_strided_slice %85 {offsets = [0, 0], sizes = [64, 128], strides = [1, 1]} : vector<128x128xf32> to vector<64x128xf32>
    %96 = vector.extract_strided_slice %92 {offsets = [0, 0], sizes = [64, 128], strides = [1, 1]} : vector<128x128xf32> to vector<64x128xf32>
    %97 = vector.extract_strided_slice %71 {offsets = [0, 0], sizes = [64, 128], strides = [1, 1]} : vector<128x128xf32> to vector<64x128xf32>
    %cst_65 = arith.constant dense<0.000000e+00> : vector<64x64xf32>
    %98 = tpu.matmul %94, %95, %cst_65 {dimension_numbers = #tpu.dot_dimension_numbers<[1], [1], [0], [0], [0, 0, 1, 0], [], []>} : vector<64x128xf32>, vector<64x128xf32>, vector<64x64xf32> -> vector<64x64xf32>
    %cst_66 = arith.constant dense<0xFF800000> : vector<64xf32>
    %99 = vector.multi_reduction <maximumf>, %98, %cst_66 [1] : vector<64x64xf32> to vector<64xf32>
    %100 = vector.shape_cast %99 : vector<64xf32> to vector<64x1xf32>
    %101 = vector.broadcast %100 : vector<64x1xf32> to vector<64x64xf32>
    %102 = arith.subf %98, %101 : vector<64x64xf32>
    %103 = math.exp %102 : vector<64x64xf32>
    %cst_67 = arith.constant dense<0.000000e+00> : vector<64xf32>
    %104 = vector.multi_reduction <add>, %103, %cst_67 [1] : vector<64x64xf32> to vector<64xf32>
    %105 = vector.shape_cast %104 : vector<64xf32> to vector<64x1xf32>
    %106 = tpu.reciprocal %105 {approx = true} : vector<64x1xf32> -> vector<64x1xf32>
    %107 = vector.broadcast %106 : vector<64x1xf32> to vector<64x64xf32>
    %108 = arith.mulf %103, %107 : vector<64x64xf32>
    %cst_68 = arith.constant dense<0.000000e+00> : vector<64x128xf32>
    %109 = tpu.matmul %108, %96, %cst_68 {dimension_numbers = #tpu.dot_dimension_numbers<[1], [0], [0], [1], [0, 0, 1, 1], [], []>} : vector<64x64xf32>, vector<64x128xf32>, vector<64x128xf32> -> vector<64x128xf32>
    %110 = vector.broadcast %93 : f32 to vector<64x128xf32>
    %111 = arith.mulf %110, %109 : vector<64x128xf32>
    %112 = arith.addf %111, %97 : vector<64x128xf32>
    %c0_69 = arith.constant 0 : index
    %c0_70 = arith.constant 0 : index
    %113 = vector.load %arg10[%c0_69, %c0_70] : memref<128x128xf32, #tpu.memory_space<vmem>>, vector<64x128xf32>
    tpu.vector_store %arg10[%c0_69, %c0_70], %112 {strides = array<i32>} : memref<128x128xf32, #tpu.memory_space<vmem>>, vector<64x128xf32>,
    %114 = vector.extract_strided_slice %78 {offsets = [64, 0], sizes = [64, 128], strides = [1, 1]} : vector<128x128xf32> to vector<64x128xf32>
    %115 = vector.extract_strided_slice %85 {offsets = [64, 0], sizes = [64, 128], strides = [1, 1]} : vector<128x128xf32> to vector<64x128xf32>
    %116 = vector.extract_strided_slice %92 {offsets = [64, 0], sizes = [64, 128], strides = [1, 1]} : vector<128x128xf32> to vector<64x128xf32>
    %117 = vector.extract_strided_slice %71 {offsets = [64, 0], sizes = [64, 128], strides = [1, 1]} : vector<128x128xf32> to vector<64x128xf32>
    %cst_71 = arith.constant dense<0.000000e+00> : vector<64x64xf32>
    %118 = tpu.matmul %114, %115, %cst_71 {dimension_numbers = #tpu.dot_dimension_numbers<[1], [1], [0], [0], [0, 0, 1, 0], [], []>} : vector<64x128xf32>, vector<64x128xf32>, vector<64x64xf32> -> vector<64x64xf32>
    %cst_72 = arith.constant dense<0xFF800000> : vector<64xf32>
    %119 = vector.multi_reduction <maximumf>, %118, %cst_72 [1] : vector<64x64xf32> to vector<64xf32>
    %120 = vector.shape_cast %119 : vector<64xf32> to vector<64x1xf32>
    %121 = vector.broadcast %120 : vector<64x1xf32> to vector<64x64xf32>
    %122 = arith.subf %118, %121 : vector<64x64xf32>
    %123 = math.exp %122 : vector<64x64xf32>
    %cst_73 = arith.constant dense<0.000000e+00> : vector<64xf32>
    %124 = vector.multi_reduction <add>, %123, %cst_73 [1] : vector<64x64xf32> to vector<64xf32>
    %125 = vector.shape_cast %124 : vector<64xf32> to vector<64x1xf32>
    %126 = tpu.reciprocal %125 {approx = true} : vector<64x1xf32> -> vector<64x1xf32>
    %127 = vector.broadcast %126 : vector<64x1xf32> to vector<64x64xf32>
    %128 = arith.mulf %123, %127 : vector<64x64xf32>
    %cst_74 = arith.constant dense<0.000000e+00> : vector<64x128xf32>
    %129 = tpu.matmul %128, %116, %cst_74 {dimension_numbers = #tpu.dot_dimension_numbers<[1], [0], [0], [1], [0, 0, 1, 1], [], []>} : vector<64x64xf32>, vector<64x128xf32>, vector<64x128xf32> -> vector<64x128xf32>
    %130 = vector.broadcast %93 : f32 to vector<64x128xf32>
    %131 = arith.mulf %130, %129 : vector<64x128xf32>
    %132 = arith.addf %131, %117 : vector<64x128xf32>
    %c64_75 = arith.constant 64 : index
    %c0_76 = arith.constant 0 : index
    %133 = vector.load %arg10[%c64_75, %c0_76] : memref<128x128xf32, #tpu.memory_space<vmem>>, vector<64x128xf32>
    tpu.vector_store %arg10[%c64_75, %c0_76], %132 {strides = array<i32>} : memref<128x128xf32, #tpu.memory_space<vmem>>, vector<64x128xf32>,
    return
  }
}

</mosaic_0001>

<bundles_post_ra>
// kernel: attention_block_forward.1
= control target key start
LH: loop header
LB: loop body
LE: loop exit
PB: predicated region body
PF: predicated region fallthrough
CT: control target
= control target key end

     0   :  { %15 = vsyncpa [#allocation3], 0  ;;  %s5519_s0 = inlined_call_operand.vmem [shape: f32[128,128], index: 0, kind: input, shape index: {}]   ;;  %s5520_s1 = inlined_call_operand.hbm [shape: f32[128,128], index: 1, kind: input, shape index: {}]   ;;  %s5521_s2 = inlined_call_operand.vmem [shape: f32[1,128], index: 2, kind: input, shape index: {}]   ;;  %s5522_s3 = inlined_call_operand.vmem [shape: f32[2,128,128], index: 3, kind: input, shape index: {}]   ;;  %s5523_s4 = inlined_call_operand.vmem [shape: f32[2,1,128], index: 4, kind: input, shape index: {}]   ;;  %s5524_s5 = inlined_call_operand.hbm [shape: f32[2,128,128], index: 5, kind: input, shape index: {}]   ;;  %s5525_s6 = inlined_call_operand.vmem [shape: f32[2,1,128], index: 6, kind: input, shape index: {}]   ;;  %s5526_s7 = inlined_call_operand.hbm [shape: f32[2,128,128], index: 7, kind: input, shape index: {}]   ;;  %s5527_s8 = inlined_call_operand.vmem [shape: f32[2,1,128], index: 8, kind: input, shape index: {}]   ;;  %s5528_s9 = inlined_call_operand.vmem [shape: f32[2], index: 9, kind: input, shape index: {}]   ;;  %s5529_s10 = inlined_call_operand.hbm [shape: f32[128,128], index: 10, kind: output, shape index: {}]  }
   0x1   :  { %16 = vsyncpa [#allocation7], 0 }
   0x2   :  { %17 = vsyncpa [#allocation5], 0 }
   0x3   :  { %18 = vsyncpa [#allocation4], 0  ;;  %s4406_s13 = smov [#allocation6]   ;;  %s4407_s15 = smov [#allocation2]  }
   0x4   :  { %s44_s14 = sshll.u32 %s4406_s13, 4  ;;  %s26_s16 = sshll.u32 %s4407_s15, 4  ;;  %s45_s14 = int_to_ptr.vmem [resolvable:$true] %s44_s14  ;;  %s4468_s16 = int_to_ptr.vmem [resolvable:$true] %s26_s16 }
   0x5   :  { %s4298_s19 = scalar_lea.hbm %s5524_s5, 4096 }
   0x6   :  { %p4299_p0 = scmp.ne.s32.totalorder %s5524_s5, %s4298_s19  ;;  %p4302_p1 = scmp.lt.u32.totalorder %s4298_s19, %s5524_s5 }
   0x8   :  { %p4304_p2 = pnand %p4302_p1, %p4299_p0 }
   0xa   :  { %4307 = shalt.err (!%p4304_p2)
}
   0xb   :  { %s4308_s24 = scalar_lea.vmem %s45_s14, 4096  ;;  %p4313_p4 = scmp.lt.s32.totalorder %s45_s14, %s45_s14 }
   0xc   :  { %p4309_p3 = scmp.ne.s32.totalorder %s45_s14, %s4308_s24  ;;  %p4314_p5 = scmp.lt.s32.totalorder %s4308_s24, %s4308_s24 }
   0xe   :  { %p4315_p6 = por %p4314_p5, %p4313_p4 }
  0x10   :  { %p4316_p7 = pnand %p4315_p6, %p4309_p3 }
  0x12   :  { %4319 = shalt.err (!%p4316_p7)
}
  0x13   :  { %s4408_s25 = smov 128   ;;  %s4409_s26 = smov 8  }
  0x14   :  { %50 = dma.hbm_to_vmem [thread:$0]  %s5524_s5, 4096, %s45_s14, [#allocation7], %s4408_s25, %s4408_s25, %s4409_s26  }
  0x15   :  { %s4320_s11 = scalar_lea.hbm %s5520_s1, 2048 }
  0x16   :  { %p4321_p8 = scmp.ne.s32.totalorder %s5520_s1, %s4320_s11  ;;  %p4324_p9 = scmp.lt.u32.totalorder %s4320_s11, %s5520_s1 }
  0x18   :  { %p4326_p10 = pnand %p4324_p9, %p4321_p8 }
  0x1a   :  { %4329 = shalt.err (!%p4326_p10)
}
  0x1b   :  { %s4330_s18 = scalar_lea.vmem %s4468_s16, 2048  ;;  %p4335_p12 = scmp.lt.s32.totalorder %s4468_s16, %s4468_s16 }
  0x1c   :  { %p4331_p11 = scmp.ne.s32.totalorder %s4468_s16, %s4330_s18  ;;  %p4336_p13 = scmp.lt.s32.totalorder %s4330_s18, %s4330_s18 }
  0x1e   :  { %p4337_p0 = por %p4336_p13, %p4335_p12 }
  0x20   :  { %p4338_p1 = pnand %p4337_p0, %p4331_p11 }
  0x22   :  { %4341 = shalt.err (!%p4338_p1)
}
  0x23   :  { %32 = dma.hbm_to_vmem [thread:$0]  %s5520_s1, 2048, %s4468_s16, [#allocation3], %s4408_s25, %s4408_s25, %s4409_s26  }
  0x24   :  { %s73_s21 = sshll.u32 %s5528_s9, 4  ;;  %s4410_s22 = smov [#allocation8]   ;;  %s74_s21 = int_to_ptr.vmem [resolvable:$true] %s73_s21 }
  0x25   :  { %s58_s23 = sshll.u32 %s4410_s22, 4  ;;  %s4342_s28 = scalar_lea.hbm %s5526_s7, 4096  ;;  %s59_s23 = int_to_ptr.vmem [resolvable:$true] %s58_s23 }
  0x26   :  { %p4343_p2 = scmp.ne.s32.totalorder %s5526_s7, %s4342_s28  ;;  %p4346_p3 = scmp.lt.u32.totalorder %s4342_s28, %s5526_s7 }
  0x28   :  { %p4348_p4 = pnand %p4346_p3, %p4343_p2 }
  0x2a   :  { %4351 = shalt.err (!%p4348_p4)
}
  0x2b   :  { %s4352_s1 = scalar_lea.vmem %s59_s23, 4096  ;;  %p4357_p6 = scmp.lt.s32.totalorder %s59_s23, %s59_s23 }
  0x2c   :  { %p4353_p5 = scmp.ne.s32.totalorder %s59_s23, %s4352_s1  ;;  %p4358_p7 = scmp.lt.s32.totalorder %s4352_s1, %s4352_s1 }
  0x2e   :  { %p4359_p8 = por %p4358_p7, %p4357_p6 }
  0x30   :  { %p4360_p9 = pnand %p4359_p8, %p4353_p5 }
  0x32   :  { %4363 = shalt.err (!%p4360_p9)
}
  0x33   :  { %64 = dma.hbm_to_vmem [thread:$0]  %s5526_s7, 4096, %s59_s23, [#allocation7], %s4408_s25, %s4408_s25, %s4409_s26  }
  0x34   :  { %s4364_s13 = scalar_lea.vmem %s74_s21, 16  ;;  %p4369_p11 = scmp.lt.s32.totalorder %s74_s21, %s74_s21 }
  0x35   :  { %p4365_p10 = scmp.ne.s32.totalorder %s74_s21, %s4364_s13  ;;  %p4370_p12 = scmp.lt.s32.totalorder %s4364_s13, %s4364_s13 }
  0x37   :  { %p4371_p13 = por %p4370_p12, %p4369_p11 }
  0x39   :  { %p4372_p0 = pnand %p4371_p13, %p4365_p10 }
  0x3b   :  { %4375 = shalt.err (!%p4372_p0)
}
  0x3c   :  { %s4411_s15 = smov [#allocation9]  }
  0x3d   :  { %76 = dma.vmem_to_smem %s74_s21, 16, %s4411_s15, [#allocation5]  }
  0x3e   :  { %4398 = dma.done.wait [#allocation3], 2048  }
  0x3f   :  { %4399 = vsyncadd [#allocation3], 4294965248 }
  0x40   :  { %4400 = dma.done.wait [#allocation7], 8192  }
  0x41   :  { %4401 = vsyncadd [#allocation7], 4294959104 }
  0x42   :  { %4402 = dma.done.wait [#allocation5], 16  }
  0x43   :  { %4403 = vsyncadd [#allocation5], 4294967280 }
  0x44   :  { %89 = sfence }
  0x45   :  { %v106_v0 = vld [vmem:[#allocation2] sm:$0xff]  ;;  %v107_v1 = vld [vmem:[#allocation2 + $0x8] sm:$0xff]  ;;  %v108_v2 = vld [vmem:[#allocation2 + $0x10] sm:$0xff]  ;;  %vm948_vm0 = vcmask 523264   ;;  %s842_s28 = sld [smem:[#allocation9]]  ;;  %s4412_s11 = smov [#allocation10]  }
  0x46   :  { %v3803_v3 = vpack.c.bf16 %v107_v1, %v106_v0  ;;  %v109_v4 = vld [vmem:[#allocation2 + $0x18] sm:$0xff]  ;;  %v110_v6 = vld [vmem:[#allocation2 + $0x20] sm:$0xff]  ;;  %v111_v7 = vld [vmem:[#allocation2 + $0x28] sm:$0xff]  ;;  %s2762_s12 = sshll.u32 %s4412_s11, 4  ;;  %s2763_s12 = int_to_ptr.vmem [resolvable:$true] %s2762_s12 }
  0x47   :  { %v3807_v5 = vpack.c.bf16 %v109_v4, %v108_v2  ;;  %v3811_v8 = vpack.c.bf16 %v111_v7, %v110_v6  ;;  %v4526_v9 = vld [vmem:[%s5519_s0] sm:$0xff]  ;;  %v112_v10 = vld [vmem:[#allocation2 + $0x30] sm:$0xff]  ;;  %v113_v11 = vld [vmem:[#allocation2 + $0x38] sm:$0xff]  ;;  %s4376_s1 = scalar_lea.vmem %s2763_s12, 2048  ;;  %p4381_p2 = scmp.lt.s32.totalorder %s2763_s12, %s2763_s12 }
  0x48   :  { %3804 = vmatprep.subr.bf16.mxu0 %v3803_v3  ;;  %3219 = vmatprep.mubr.f32.mxu0 %v4526_v9  ;;  %v3815_v12 = vpack.c.bf16 %v113_v11, %v112_v10  ;;  %v114_v13 = vld [vmem:[#allocation2 + $0x40] sm:$0xff]  ;;  %v115_v14 = vld [vmem:[#allocation2 + $0x48] sm:$0xff]  ;;  %v340_v18 = vld [vmem:[%s5522_s3 + $0x10] sm:$0xff]  ;;  %p4377_p1 = scmp.ne.s32.totalorder %s2763_s12, %s4376_s1  ;;  %p4382_p3 = scmp.lt.s32.totalorder %s4376_s1, %s4376_s1 }
  0x49   :  { %3806 = vmatpush3.bf16.msra.mxu0 %v3803_v3  ;;  %v338_v15 = vld [vmem:[%s5522_s3] sm:$0xff]  ;;  %v339_v16 = vld [vmem:[%s5522_s3 + $0x8] sm:$0xff]  ;;  %v341_v19 = vld [vmem:[%s5522_s3 + $0x18] sm:$0xff]  ;;  %v3819_v20 = vpack.c.bf16 %v115_v14, %v114_v13 }
  0x4a   :  { %3808 = vmatprep.subr.bf16.mxu0 %v3807_v5  ;;  %v3835_v17 = vpack.c.bf16 %v339_v16, %v338_v15  ;;  %v3839_v21 = vpack.c.bf16 %v341_v19, %v340_v18  ;;  %v342_v22 = vld [vmem:[%s5522_s3 + $0x20] sm:$0xff]  ;;  %v343_v23 = vld [vmem:[%s5522_s3 + $0x28] sm:$0xff]  ;;  %v116_v24 = vld [vmem:[#allocation2 + $0x50] sm:$0xff]  ;;  %p4383_p4 = por %p4382_p3, %p4381_p2 }
  0x4b   :  { %v117_v25 = vld [vmem:[#allocation2 + $0x58] sm:$0xff]  ;;  %v3843_v26 = vpack.c.bf16 %v343_v23, %v342_v22  ;;  %v344_v28 = vld [vmem:[%s5522_s3 + $0x30] sm:$0xff]  ;;  %v118_v30 = vld [vmem:[#allocation2 + $0x60] sm:$0xff] }
  0x4c   :  { %3836 = vmatprep.subr.bf16.mxu1 %v3835_v17  ;;  %v3823_v27 = vpack.c.bf16 %v117_v25, %v116_v24  ;;  %v345_v29 = vld [vmem:[%s5522_s3 + $0x38] sm:$0xff]  ;;  %v119_v31 = vld [vmem:[#allocation2 + $0x68] sm:$0xff]  ;;  %v346_v34 = vld [vmem:[%s5522_s3 + $0x40] sm:$0xff]  ;;  %p4384_p5 = pnand %p4383_p4, %p4377_p1 }
  0x4d   :  { %3810 = vmatpush3.bf16.msra.mxu0 %v3807_v5  ;;  %3838 = vmatpush3.bf16.msra.mxu1 %v3835_v17  ;;  %v3847_v32 = vpack.c.bf16 %v345_v29, %v344_v28  ;;  %v3827_v33 = vpack.c.bf16 %v119_v31, %v118_v30  ;;  %v347_v35 = vld [vmem:[%s5522_s3 + $0x48] sm:$0xff]  ;;  %v120_v36 = vld [vmem:[#allocation2 + $0x70] sm:$0xff]  ;;  %v121_v37 = vld [vmem:[#allocation2 + $0x78] sm:$0xff] }
  0x4e   :  { %3812 = vmatprep.subr.bf16.mxu0 %v3811_v8  ;;  %3840 = vmatprep.subr.bf16.mxu1 %v3839_v21  ;;  %v3851_v38 = vpack.c.bf16 %v347_v35, %v346_v34  ;;  %v3831_v39 = vpack.c.bf16 %v121_v37, %v120_v36  ;;  %v506_v40 = vld [vmem:[#allocation6] sm:$0xff]  ;;  %v507_v41 = vld [vmem:[#allocation6 + $0x8] sm:$0xff]  ;;  %v508_v43 = vld [vmem:[#allocation6 + $0x10] sm:$0xff] }
  0x4f   :  { %v3867_v42 = vpack.c.bf16 %v507_v41, %v506_v40  ;;  %v509_v44 = vld [vmem:[#allocation6 + $0x18] sm:$0xff]  ;;  %v4562_v45 = vld [vmem:[%s5519_s0 + $0x8] sm:$0xff]  ;;  %v4567_v46 = vld [vmem:[%s5519_s0 + $0x10] sm:$0xff] }
  0x50   :  { %v3871_v47 = vpack.c.bf16 %v509_v44, %v508_v43  ;;  %v510_v48 = vld [vmem:[#allocation6 + $0x20] sm:$0xff]  ;;  %v511_v49 = vld [vmem:[#allocation6 + $0x28] sm:$0xff]  ;;  %v4574_v50 = vld [vmem:[%s5519_s0 + $0x18] sm:$0xff] }
  0x51   :  { %3814 = vmatpush3.bf16.msra.mxu0 %v3811_v8  ;;  %3842 = vmatpush3.bf16.msra.mxu1 %v3839_v21  ;;  %v4579_v51 = vld [vmem:[%s5519_s0 + $0x20] sm:$0xff]  ;;  %v3875_v52 = vpack.c.bf16 %v511_v49, %v510_v48  ;;  %v512_v53 = vld [vmem:[#allocation6 + $0x30] sm:$0xff]  ;;  %v513_v54 = vld [vmem:[#allocation6 + $0x38] sm:$0xff] }
  0x52   :  { %3816 = vmatprep.subr.bf16.mxu0 %v3815_v12  ;;  %3844 = vmatprep.subr.bf16.mxu1 %v3843_v26  ;;  %v4586_v55 = vld [vmem:[%s5519_s0 + $0x28] sm:$0xff]  ;;  %v4591_v56 = vld [vmem:[%s5519_s0 + $0x30] sm:$0xff]  ;;  %v3879_v57 = vpack.c.bf16 %v513_v54, %v512_v53  ;;  %v514_v58 = vld [vmem:[#allocation6 + $0x40] sm:$0xff] }
  0x53   :  { %v515_v59 = vld [vmem:[#allocation6 + $0x48] sm:$0xff]  ;;  %v4598_v60 = vld [vmem:[%s5519_s0 + $0x38] sm:$0xff]  ;;  %v4603_v61 = vld [vmem:[%s5519_s0 + $0x40] sm:$0xff] }
  0x54   :  { %v3883_v62 = vpack.c.bf16 %v515_v59, %v514_v58  ;;  %v4610_v63 = vld [vmem:[%s5519_s0 + $0x48] sm:$0xff]  ;;  %v4615_v0 = vld [vmem:[%s5519_s0 + $0x50] sm:$0xff]  ;;  %v4622_v1 = vld [vmem:[%s5519_s0 + $0x58] sm:$0xff] }
  0x55   :  { %3818 = vmatpush3.bf16.msra.mxu0 %v3815_v12  ;;  %3846 = vmatpush3.bf16.msra.mxu1 %v3843_v26  ;;  %v4627_v2 = vld [vmem:[%s5519_s0 + $0x60] sm:$0xff]  ;;  %v4634_v3 = vld [vmem:[%s5519_s0 + $0x68] sm:$0xff]  ;;  %v4639_v4 = vld [vmem:[%s5519_s0 + $0x70] sm:$0xff] }
  0x56   :  { %3820 = vmatprep.subr.bf16.mxu0 %v3819_v20  ;;  %3848 = vmatprep.subr.bf16.mxu1 %v3847_v32  ;;  %v4646_v5 = vld [vmem:[%s5519_s0 + $0x78] sm:$0xff]  ;;  %v348_v6 = vld [vmem:[%s5522_s3 + $0x50] sm:$0xff]  ;;  %v350_v13 = vld [vmem:[%s5522_s3 + $0x60] sm:$0xff] }
  0x57   :  { %v349_v7 = vld [vmem:[%s5522_s3 + $0x58] sm:$0xff]  ;;  %v516_v8 = vld [vmem:[#allocation6 + $0x50] sm:$0xff]  ;;  %v351_v14 = vld [vmem:[%s5522_s3 + $0x68] sm:$0xff] }
  0x58   :  { %v3855_v10 = vpack.c.bf16 %v349_v7, %v348_v6  ;;  %v517_v11 = vld [vmem:[#allocation6 + $0x58] sm:$0xff]  ;;  %v518_v15 = vld [vmem:[#allocation6 + $0x60] sm:$0xff]  ;;  %v3859_v16 = vpack.c.bf16 %v351_v14, %v350_v13  ;;  %v519_v17 = vld [vmem:[#allocation6 + $0x68] sm:$0xff] }
  0x59   :  { %3822 = vmatpush3.bf16.msra.mxu0 %v3819_v20  ;;  %3850 = vmatpush3.bf16.msra.mxu1 %v3847_v32  ;;  %v3887_v12 = vpack.c.bf16 %v517_v11, %v516_v8  ;;  %v3891_v18 = vpack.c.bf16 %v519_v17, %v518_v15  ;;  %v352_v19 = vld [vmem:[%s5522_s3 + $0x70] sm:$0xff]  ;;  %v353_v20 = vld [vmem:[%s5522_s3 + $0x78] sm:$0xff]  ;;  %v674_v25 = vld [vmem:[#allocation8] sm:$0xff] }
  0x5a   :  { %3824 = vmatprep.subr.bf16.mxu0 %v3823_v27  ;;  %3852 = vmatprep.subr.bf16.mxu1 %v3851_v38  ;;  %v520_v21 = vld [vmem:[#allocation6 + $0x70] sm:$0xff]  ;;  %v3863_v22 = vpack.c.bf16 %v353_v20, %v352_v19  ;;  %v521_v23 = vld [vmem:[#allocation6 + $0x78] sm:$0xff]  ;;  %v675_v26 = vld [vmem:[#allocation8 + $0x8] sm:$0xff] }
  0x5b   :  { %v3895_v24 = vpack.c.bf16 %v521_v23, %v520_v21  ;;  %v4671_v30 = vld [vmem:[%s5521_s2] ss:$0 sm:$0xff]  ;;  %v677_v34 = vld [vmem:[#allocation8 + $0x18] sm:$0xff]  ;;  %v683_v6 = vld [vmem:[#allocation8 + $0x48] sm:$0xff] }
  0x5c   :  { %v684_v13 = vld [vmem:[#allocation8 + $0x50] sm:$0xff]  ;;  %v685_v14 = vld [vmem:[#allocation8 + $0x58] sm:$0xff]  ;;  %v686_v20 = vld [vmem:[#allocation8 + $0x60] sm:$0xff] }
  0x5d   :  { %3826 = vmatpush3.bf16.msra.mxu0 %v3823_v27  ;;  %3854 = vmatpush3.bf16.msra.mxu1 %v3851_v38  ;;  %v3899_v27 = vpack.c.bf16 %v675_v26, %v674_v25  ;;  %v687_v21 = vld [vmem:[#allocation8 + $0x68] sm:$0xff] }
  0x5e   :  { %3828 = vmatprep.subr.bf16.mxu0 %v3827_v33  ;;  %3856 = vmatprep.subr.bf16.mxu1 %v3855_v10  ;;  %v3923_v25 = vpack.c.bf16 %v687_v21, %v686_v20 }
  0x61   :  { %3830 = vmatpush3.bf16.msra.mxu0 %v3827_v33  ;;  %3858 = vmatpush3.bf16.msra.mxu1 %v3855_v10  ;;  %v676_v33 = vld [vmem:[#allocation8 + $0x10] sm:$0xff] }
  0x62   :  { %3832 = vmatprep.subr.bf16.mxu0 %v3831_v39  ;;  %3860 = vmatprep.subr.bf16.mxu1 %v3859_v16  ;;  %v3903_v40 = vpack.c.bf16 %v677_v34, %v676_v33 }
  0x65   :  { %3834 = vmatpush3.bf16.msra.mxu0 %v3831_v39  ;;  %3862 = vmatpush3.bf16.msra.mxu1 %v3859_v16 }
  0x66   :  { %3868 = vmatprep.subr.bf16.mxu0 %v3867_v42  ;;  %3864 = vmatprep.subr.bf16.mxu1 %v3863_v22 }
  0x68   :  { %3220 = vmatmul.mubr.f32.vlgmr.msra.gmra.mrb[0].mxu0 %v4562_v45 }
  0x69   :  { %3222 = vmatprep.mubr.f32.mxu0 %v4567_v46  ;;  %3870 = vmatpush3.bf16.msra.mxu0 %v3867_v42  ;;  %v679_v42 = vld [vmem:[#allocation8 + $0x28] sm:$0xff] }
  0x6a   :  { %3872 = vmatprep.subr.bf16.mxu0 %v3871_v47  ;;  %3866 = vmatpush3.bf16.msra.mxu1 %v3863_v22 }
  0x6b   :  { %3900 = vmatprep.subr.bf16.mxu1 %v3899_v27 }
  0x6c   :  { %3223 = vmatmul.mubr.f32.gmra.mrb[2].mxu0 %v4574_v50 }
  0x6d   :  { %3225 = vmatprep.mubr.f32.mxu0 %v4579_v51  ;;  %3874 = vmatpush3.bf16.msra.mxu0 %v3871_v47 }
  0x6e   :  { %3876 = vmatprep.subr.bf16.mxu0 %v3875_v52 }
  0x70   :  { %3226 = vmatmul.mubr.f32.gmra.mrb[4].mxu0 %v4586_v55 }
  0x71   :  { %3228 = vmatprep.mubr.f32.mxu0 %v4591_v56  ;;  %3878 = vmatpush3.bf16.msra.mxu0 %v3875_v52  ;;  %v681_v52 = vld [vmem:[#allocation8 + $0x38] sm:$0xff] }
  0x72   :  { %3880 = vmatprep.subr.bf16.mxu0 %v3879_v57 }
  0x74   :  { %3229 = vmatmul.mubr.f32.gmra.mrb[6].mxu0 %v4598_v60 }
  0x75   :  { %3231 = vmatprep.mubr.f32.mxu0 %v4603_v61  ;;  %3882 = vmatpush3.bf16.msra.mxu0 %v3879_v57 }
  0x76   :  { %3884 = vmatprep.subr.bf16.mxu0 %v3883_v62 }
  0x78   :  { %3232 = vmatmul.mubr.f32.gmra.mrb[8].mxu0 %v4610_v63 }
  0x79   :  { %3234 = vmatprep.mubr.f32.mxu0 %v4615_v0  ;;  %3886 = vmatpush3.bf16.msra.mxu0 %v3883_v62  ;;  %v682_v62 = vld [vmem:[#allocation8 + $0x40] sm:$0xff] }
  0x7a   :  { %3888 = vmatprep.subr.bf16.mxu0 %v3887_v12  ;;  %v3915_v11 = vpack.c.bf16 %v683_v6, %v682_v62 }
  0x7c   :  { %3235 = vmatmul.mubr.f32.gmra.mrb[10].mxu0 %v4622_v1 }
  0x7d   :  { %3237 = vmatprep.mubr.f32.mxu0 %v4627_v2  ;;  %3890 = vmatpush3.bf16.msra.mxu0 %v3887_v12 }
  0x7e   :  { %3892 = vmatprep.subr.bf16.mxu0 %v3891_v18 }
  0x80   :  { %3238 = vmatmul.mubr.f32.gmra.mrb[12].mxu0 %v4634_v3 }
  0x81   :  { %3240 = vmatprep.mubr.f32.mxu0 %v4639_v4  ;;  %3894 = vmatpush3.bf16.msra.mxu0 %v3891_v18  ;;  %v3919_v18 = vpack.c.bf16 %v685_v14, %v684_v13 }
  0x82   :  { %3896 = vmatprep.subr.bf16.mxu0 %v3895_v24 }
  0x84   :  { %3241 = vmatmul.mubr.f32.gmra.mrb[14].mxu0 %v4646_v5 }
  0x85   :  { %3898 = vmatpush3.bf16.msra.mxu0 %v3895_v24 }
 0x13b   :  { %v3221_v28 = vpop.f32.mrb[0].mxu0 }
 0x13c   :  { %v268_v29 = vadd.f32 %v3221_v28, %v4562_v45  ;;  %v188_v31 = vpop.f32.mrb[1].mxu0  ;;  %v689_v28 = vld [vmem:[#allocation8 + $0x78] sm:$0xff] }
 0x13d   :  { %v267_v32 = vadd.f32 %v188_v31, %v4526_v9  ;;  %v678_v9 = vld [vmem:[#allocation8 + $0x20] sm:$0xff] }
 0x13e   :  { %v4678_v37 = vadd.f32 %v4671_v30, %v268_v29  ;;  %v3907_v48 = vpack.c.bf16 %v679_v42, %v678_v9 }
 0x13f   :  { %v4675_v35 = vadd.f32 %v4671_v30, %v267_v32  ;;  %v3224_v36 = vpop.f32.mrb[2].mxu0 }
 0x140   :  { %v270_v38 = vadd.f32 %v3224_v36, %v4574_v50  ;;  %v198_v39 = vpop.f32.mrb[3].mxu0  ;;  %v680_v50 = vld [vmem:[#allocation8 + $0x30] sm:$0xff] }
 0x141   :  { %v269_v41 = vadd.f32 %v198_v39, %v4567_v46  ;;  %3275 = vmatprep.mubr.f32.mxu1 %v4675_v35  ;;  %3331 = vmatprep.mubr.f32.mxu0 %v4675_v35  ;;  %v3911_v58 = vpack.c.bf16 %v681_v52, %v680_v50 }
 0x142   :  { %v4685_v43 = vadd.f32 %v4671_v30, %v270_v38  ;;  %3276 = vmatmul.mubr.f32.vlgmr.msra.gmra.mrb[0].mxu1 %v4678_v37  ;;  %3332 = vmatmul.mubr.f32.vlgmr.msra.gmra.mrb[16].mxu0 %v4678_v37 }
 0x143   :  { %v4690_v44 = vadd.f32 %v4671_v30, %v269_v41  ;;  %v3227_v45 = vpop.f32.mrb[4].mxu0  ;;  %3902 = vmatpush3.bf16.msra.mxu1 %v3899_v27  ;;  %v688_v27 = vld [vmem:[#allocation8 + $0x70] sm:$0xff] }
 0x144   :  { %v272_v46 = vadd.f32 %v3227_v45, %v4586_v55  ;;  %v208_v47 = vpop.f32.mrb[5].mxu0  ;;  %3904 = vmatprep.subr.bf16.mxu1 %v3903_v40  ;;  %v3927_v33 = vpack.c.bf16 %v689_v28, %v688_v27 }
 0x145   :  { %v271_v49 = vadd.f32 %v208_v47, %v4579_v51  ;;  %3278 = vmatprep.mubr.f32.mxu1 %v4690_v44  ;;  %3334 = vmatprep.mubr.f32.mxu0 %v4690_v44 }
 0x146   :  { %v4697_v53 = vadd.f32 %v4671_v30, %v272_v46  ;;  %3279 = vmatmul.mubr.f32.gmra.mrb[2].mxu1 %v4685_v43  ;;  %3335 = vmatmul.mubr.f32.gmra.mrb[18].mxu0 %v4685_v43 }
 0x147   :  { %v4702_v54 = vadd.f32 %v4671_v30, %v271_v49  ;;  %v3230_v55 = vpop.f32.mrb[6].mxu0  ;;  %3906 = vmatpush3.bf16.msra.mxu1 %v3903_v40 }
 0x148   :  { %v274_v51 = vadd.f32 %v3230_v55, %v4598_v60  ;;  %v218_v57 = vpop.f32.mrb[7].mxu0  ;;  %3908 = vmatprep.subr.bf16.mxu1 %v3907_v48 }
 0x149   :  { %v273_v59 = vadd.f32 %v218_v57, %v4591_v56  ;;  %3281 = vmatprep.mubr.f32.mxu1 %v4702_v54  ;;  %3337 = vmatprep.mubr.f32.mxu0 %v4702_v54 }
 0x14a   :  { %v4709_v7 = vadd.f32 %v4671_v30, %v274_v51  ;;  %3282 = vmatmul.mubr.f32.gmra.mrb[4].mxu1 %v4697_v53  ;;  %3338 = vmatmul.mubr.f32.gmra.mrb[20].mxu0 %v4697_v53 }
 0x14b   :  { %v4714_v60 = vadd.f32 %v4671_v30, %v273_v59  ;;  %v3233_v8 = vpop.f32.mrb[8].mxu0  ;;  %3910 = vmatpush3.bf16.msra.mxu1 %v3907_v48 }
 0x14c   :  { %v276_v56 = vadd.f32 %v3233_v8, %v4610_v63  ;;  %v228_v10 = vpop.f32.mrb[9].mxu0  ;;  %3912 = vmatprep.subr.bf16.mxu1 %v3911_v58 }
 0x14d   :  { %v275_v12 = vadd.f32 %v228_v10, %v4603_v61  ;;  %3284 = vmatprep.mubr.f32.mxu1 %v4714_v60  ;;  %3340 = vmatprep.mubr.f32.mxu0 %v4714_v60 }
 0x14e   :  { %v4721_v15 = vadd.f32 %v4671_v30, %v276_v56  ;;  %3285 = vmatmul.mubr.f32.gmra.mrb[6].mxu1 %v4709_v7  ;;  %3341 = vmatmul.mubr.f32.gmra.mrb[22].mxu0 %v4709_v7 }
 0x14f   :  { %v4726_v63 = vadd.f32 %v4671_v30, %v275_v12  ;;  %v3236_v16 = vpop.f32.mrb[10].mxu0  ;;  %3914 = vmatpush3.bf16.msra.mxu1 %v3911_v58 }
 0x150   :  { %v278_v61 = vadd.f32 %v3236_v16, %v4622_v1  ;;  %v238_v17 = vpop.f32.mrb[11].mxu0  ;;  %3916 = vmatprep.subr.bf16.mxu1 %v3915_v11 }
 0x151   :  { %v277_v19 = vadd.f32 %v238_v17, %v4615_v0  ;;  %3287 = vmatprep.mubr.f32.mxu1 %v4726_v63  ;;  %3343 = vmatprep.mubr.f32.mxu0 %v4726_v63 }
 0x152   :  { %v4733_v22 = vadd.f32 %v4671_v30, %v278_v61  ;;  %3288 = vmatmul.mubr.f32.gmra.mrb[8].mxu1 %v4721_v15  ;;  %3344 = vmatmul.mubr.f32.gmra.mrb[24].mxu0 %v4721_v15 }
 0x153   :  { %v4738_v1 = vadd.f32 %v4671_v30, %v277_v19  ;;  %v3239_v23 = vpop.f32.mrb[12].mxu0  ;;  %3918 = vmatpush3.bf16.msra.mxu1 %v3915_v11 }
 0x154   :  { %v280_v0 = vadd.f32 %v3239_v23, %v4634_v3  ;;  %v248_v24 = vpop.f32.mrb[13].mxu0  ;;  %3920 = vmatprep.subr.bf16.mxu1 %v3919_v18 }
 0x155   :  { %v279_v26 = vadd.f32 %v248_v24, %v4627_v2  ;;  %3290 = vmatprep.mubr.f32.mxu1 %v4738_v1  ;;  %3346 = vmatprep.mubr.f32.mxu0 %v4738_v1 }
 0x156   :  { %v4745_v29 = vadd.f32 %v4671_v30, %v280_v0  ;;  %3291 = vmatmul.mubr.f32.gmra.mrb[10].mxu1 %v4733_v22  ;;  %3347 = vmatmul.mubr.f32.gmra.mrb[26].mxu0 %v4733_v22 }
 0x157   :  { %v4750_v3 = vadd.f32 %v4671_v30, %v279_v26  ;;  %v3242_v31 = vpop.f32.mrb[14].mxu0  ;;  %3922 = vmatpush3.bf16.msra.mxu1 %v3919_v18 }
 0x158   :  { %v282_v2 = vadd.f32 %v3242_v31, %v4646_v5  ;;  %v258_v32 = vpop.f32.mrb[15].mxu0  ;;  %3924 = vmatprep.subr.bf16.mxu1 %v3923_v25  ;;  %v4792_v5 = vld [vmem:[%s5523_s4] ss:$0 sm:$0xff] }
 0x159   :  { %v281_v34 = vadd.f32 %v258_v32, %v4639_v4  ;;  %3293 = vmatprep.mubr.f32.mxu1 %v4750_v3  ;;  %3349 = vmatprep.mubr.f32.mxu0 %v4750_v3  ;;  %v4787_v4 = vld [vmem:[%s5525_s6] ss:$0 sm:$0xff] }
 0x15a   :  { %v4757_v36 = vadd.f32 %v4671_v30, %v282_v2  ;;  %3294 = vmatmul.mubr.f32.gmra.mrb[12].mxu1 %v4745_v29  ;;  %3350 = vmatmul.mubr.f32.gmra.mrb[28].mxu0 %v4745_v29 }
 0x15b   :  { %v4762_v38 = vadd.f32 %v4671_v30, %v281_v34  ;;  %3926 = vmatpush3.bf16.msra.mxu1 %v3923_v25 }
 0x15c   :  { %3928 = vmatprep.subr.bf16.mxu1 %v3927_v33 }
 0x15d   :  { %3296 = vmatprep.mubr.f32.mxu1 %v4762_v38  ;;  %3352 = vmatprep.mubr.f32.mxu0 %v4762_v38 }
 0x15e   :  { %3297 = vmatmul.mubr.f32.gmra.mrb[14].mxu1 %v4757_v36  ;;  %3353 = vmatmul.mubr.f32.gmra.mrb[30].mxu0 %v4757_v36 }
 0x15f   :  { %3930 = vmatpush3.bf16.msra.mxu1 %v3927_v33  ;;  %3387 = vmatprep.mubr.f32.mxu1 %v4675_v35 }
 0x162   :  { %3388 = vmatmul.mubr.f32.vlgmr.msra.gmra.mrb[16].mxu1 %v4678_v37 }
 0x163   :  { %3390 = vmatprep.mubr.f32.mxu1 %v4690_v44 }
 0x166   :  { %3391 = vmatmul.mubr.f32.gmra.mrb[18].mxu1 %v4685_v43 }
 0x167   :  { %3393 = vmatprep.mubr.f32.mxu1 %v4702_v54 }
 0x16a   :  { %3394 = vmatmul.mubr.f32.gmra.mrb[20].mxu1 %v4697_v53 }
 0x16b   :  { %3396 = vmatprep.mubr.f32.mxu1 %v4714_v60 }
 0x16e   :  { %3397 = vmatmul.mubr.f32.gmra.mrb[22].mxu1 %v4709_v7 }
 0x16f   :  { %3399 = vmatprep.mubr.f32.mxu1 %v4726_v63 }
 0x172   :  { %3400 = vmatmul.mubr.f32.gmra.mrb[24].mxu1 %v4721_v15 }
 0x173   :  { %3402 = vmatprep.mubr.f32.mxu1 %v4738_v1 }
 0x176   :  { %3403 = vmatmul.mubr.f32.gmra.mrb[26].mxu1 %v4733_v22 }
 0x177   :  { %3405 = vmatprep.mubr.f32.mxu1 %v4750_v3 }
 0x17a   :  { %3406 = vmatmul.mubr.f32.gmra.mrb[28].mxu1 %v4745_v29 }
 0x17b   :  { %3408 = vmatprep.mubr.f32.mxu1 %v4762_v38 }
 0x17e   :  { %3409 = vmatmul.mubr.f32.gmra.mrb[30].mxu1 %v4757_v36 }
 0x215   :  { %v4794_v30 = vpop.f32.mrb[0].mxu1  ;;  %v3333_v39 = vpop.f32.mrb[16].mxu0 }
 0x216   :  { %v601_v40 = vadd.f32 %v3333_v39, %v4787_v4  ;;  %v427_v41 = vpop.f32.mrb[1].mxu1  ;;  %v595_v9 = vpop.f32.mrb[17].mxu0 }
 0x217   :  { %v428_v42 = vadd.f32 %v4792_v5, %v427_v41  ;;  %v596_v45 = vadd.f32 %v4787_v4, %v595_v9 }
 0x219   :  { %v3931_v46 = vpack.c.bf16 %v601_v40, %v596_v45  ;;  %3427 = vmatprep.mubr.f32.mxu0 %v428_v42  ;;  %v4799_v47 = vpop.f32.mrb[2].mxu1  ;;  %v3336_v48 = vpop.f32.mrb[18].mxu0 }
 0x21a   :  { %v611_v49 = vadd.f32 %v3336_v48, %v4787_v4  ;;  %v4802_v50 = vpop.f32.mrb[3].mxu1  ;;  %v605_v52 = vpop.f32.mrb[19].mxu0 }
 0x21b   :  { %v606_v55 = vadd.f32 %v4787_v4, %v605_v52  ;;  %3932 = vmatprep.subr.bf16.mxu0 %v3931_v46 }
 0x21c   :  { %3934 = vmatpush3.bf16.xpose.msra.mxu0 %v3931_v46 }
 0x21d   :  { %v3935_v51 = vpack.c.bf16 %v611_v49, %v606_v55  ;;  %v4805_v57 = vpop.f32.mrb[4].mxu1  ;;  %v3339_v58 = vpop.f32.mrb[20].mxu0 }
 0x21e   :  { %v621_v59 = vadd.f32 %v3339_v58, %v4787_v4  ;;  %v4808_v62 = vpop.f32.mrb[5].mxu1  ;;  %v615_v6 = vpop.f32.mrb[21].mxu0 }
 0x21f   :  { %3936 = vmatprep.subr.bf16.mxu0 %v3935_v51  ;;  %v616_v8 = vadd.f32 %v4787_v4, %v615_v6 }
 0x221   :  { %v3939_v56 = vpack.c.bf16 %v621_v59, %v616_v8  ;;  %v4811_v10 = vpop.f32.mrb[6].mxu1  ;;  %v3342_v11 = vpop.f32.mrb[22].mxu0 }
 0x222   :  { %v631_v12 = vadd.f32 %v3342_v11, %v4787_v4  ;;  %v4814_v13 = vpop.f32.mrb[7].mxu1  ;;  %v625_v14 = vpop.f32.mrb[23].mxu0 }
 0x223   :  { %v626_v16 = vadd.f32 %v4787_v4, %v625_v14 }
 0x224   :  { %3938 = vmatpush3.bf16.xpose.msra.mxu0 %v3935_v51 }
 0x225   :  { %3940 = vmatprep.subr.bf16.mxu0 %v3939_v56  ;;  %v3943_v61 = vpack.c.bf16 %v631_v12, %v626_v16  ;;  %v3289_v17 = vpop.f32.mrb[8].mxu1  ;;  %v3345_v18 = vpop.f32.mrb[24].mxu0 }
 0x226   :  { %v4818_v19 = vadd.f32 %v3289_v17, %v4792_v5  ;;  %v4820_v20 = vpop.f32.mrb[9].mxu1  ;;  %v641_v21 = vadd.f32 %v3345_v18, %v4787_v4  ;;  %v635_v23 = vpop.f32.mrb[25].mxu0 }
 0x227   :  { %v636_v0 = vadd.f32 %v4787_v4, %v635_v23 }
 0x229   :  { %v3292_v24 = vpop.f32.mrb[10].mxu1  ;;  %v3963_v25 = vpack.c.bf16 %v641_v21, %v636_v0  ;;  %v3348_v26 = vpop.f32.mrb[26].mxu0  ;;  %v433_v21 = vadd.f32 %v4794_v30, %v4792_v5 }
 0x22a   :  { %v4825_v27 = vadd.f32 %v3292_v24, %v4792_v5  ;;  %v477_v28 = vpop.f32.mrb[11].mxu1  ;;  %v651_v31 = vadd.f32 %v3348_v26, %v4787_v4  ;;  %v645_v2 = vpop.f32.mrb[27].mxu0  ;;  %v438_v24 = vadd.f32 %v4792_v5, %v4802_v50 }
 0x22b   :  { %v4829_v32 = vadd.f32 %v4792_v5, %v477_v28  ;;  %v646_v33 = vadd.f32 %v4787_v4, %v645_v2  ;;  %v443_v28 = vadd.f32 %v4799_v47, %v4792_v5  ;;  %v448_v2 = vadd.f32 %v4792_v5, %v4808_v62 }
 0x22c   :  { %3942 = vmatpush3.bf16.xpose.msra.mxu0 %v3939_v56  ;;  %v4852_v56 = vld [vmem:[%s5527_s8] ss:$0 sm:$0xff] }
 0x22d   :  { %3944 = vmatprep.subr.bf16.mxu0 %v3943_v61  ;;  %v3295_v34 = vpop.f32.mrb[12].mxu1  ;;  %v3967_v39 = vpack.c.bf16 %v651_v31, %v646_v33  ;;  %v3351_v40 = vpop.f32.mrb[28].mxu0 }
 0x22e   :  { %v4833_v41 = vadd.f32 %v3295_v34, %v4792_v5  ;;  %v487_v9 = vpop.f32.mrb[13].mxu1  ;;  %v661_v42 = vadd.f32 %v3351_v40, %v4787_v4  ;;  %v655_v45 = vpop.f32.mrb[29].mxu0  ;;  %v453_v40 = vadd.f32 %v4805_v57, %v4792_v5 }
 0x22f   :  { %v4837_v46 = vadd.f32 %v4792_v5, %v487_v9  ;;  %v656_v48 = vadd.f32 %v4787_v4, %v655_v45 }
 0x231   :  { %v3298_v49 = vpop.f32.mrb[14].mxu1  ;;  %v4840_v52 = vpack.c.bf16 %v661_v42, %v656_v48  ;;  %v3354_v55 = vpop.f32.mrb[30].mxu0  ;;  %v463_v48 = vadd.f32 %v4811_v10, %v4792_v5 }
 0x232   :  { %v4843_v51 = vadd.f32 %v3298_v49, %v4792_v5  ;;  %v497_v58 = vpop.f32.mrb[15].mxu1  ;;  %v671_v59 = vadd.f32 %v3354_v55, %v4787_v4  ;;  %v665_v6 = vpop.f32.mrb[31].mxu0  ;;  %v468_v55 = vadd.f32 %v4792_v5, %v4820_v20 }
 0x233   :  { %v4847_v8 = vadd.f32 %v4792_v5, %v497_v58  ;;  %v666_v11 = vadd.f32 %v4787_v4, %v665_v6 }
 0x234   :  { %3946 = vmatpush3.bf16.xpose.msra.mxu0 %v3943_v61 }
 0x235   :  { %v3389_v12 = vpop.f32.mrb[16].mxu1  ;;  %3964 = vmatprep.subr.bf16.mxu0 %v3963_v25  ;;  %v4855_v14 = vpack.c.bf16 %v671_v59, %v666_v11 }
 0x236   :  { %v769_v16 = vadd.f32 %v3389_v12, %v4852_v56  ;;  %v763_v17 = vpop.f32.mrb[17].mxu1 }
 0x237   :  { %v764_v18 = vadd.f32 %v4852_v56, %v763_v17 }
 0x239   :  { %v3947_v23 = vpack.c.bf16 %v769_v16, %v764_v18  ;;  %v3392_v0 = vpop.f32.mrb[18].mxu1 }
 0x23a   :  { %v779_v4 = vadd.f32 %v3392_v0, %v4852_v56  ;;  %v773_v61 = vpop.f32.mrb[19].mxu1 }
 0x23b   :  { %v774_v26 = vadd.f32 %v4852_v56, %v773_v61  ;;  %3428 = vmatmul.mubr.f32.vlgmr.msra.gmra.mrb[32].mxu0 %v433_v21  ;;  %3948 = vmatprep.subr.bf16.mxu1 %v3947_v23 }
 0x23c   :  { %3430 = vmatprep.mubr.f32.mxu0 %v438_v24  ;;  %3950 = vmatpush3.bf16.msra.mxu1 %v3947_v23 }
 0x23d   :  { %v3951_v31 = vpack.c.bf16 %v779_v4, %v774_v26  ;;  %3966 = vmatpush3.bf16.xpose.msra.mxu0 %v3963_v25  ;;  %v3395_v30 = vpop.f32.mrb[20].mxu1  ;;  %v458_v25 = vadd.f32 %v4792_v5, %v4814_v13 }
 0x23e   :  { %v789_v50 = vadd.f32 %v3395_v30, %v4852_v56  ;;  %v783_v33 = vpop.f32.mrb[21].mxu1  ;;  %3968 = vmatprep.subr.bf16.mxu0 %v3967_v39 }
 0x23f   :  { %v784_v34 = vadd.f32 %v4852_v56, %v783_v33  ;;  %3431 = vmatmul.mubr.f32.gmra.mrb[34].mxu0 %v443_v28  ;;  %3952 = vmatprep.subr.bf16.mxu1 %v3951_v31 }
 0x240   :  { %3433 = vmatprep.mubr.f32.mxu0 %v448_v2  ;;  %3954 = vmatpush3.bf16.msra.mxu1 %v3951_v31 }
 0x241   :  { %v3955_v47 = vpack.c.bf16 %v789_v50, %v784_v34  ;;  %v3398_v9 = vpop.f32.mrb[22].mxu1 }
 0x242   :  { %v799_v62 = vadd.f32 %v3398_v9, %v4852_v56  ;;  %v793_v42 = vpop.f32.mrb[23].mxu1 }
 0x243   :  { %v794_v45 = vadd.f32 %v4852_v56, %v793_v42  ;;  %3434 = vmatmul.mubr.f32.gmra.mrb[36].mxu0 %v453_v40  ;;  %3956 = vmatprep.subr.bf16.mxu1 %v3955_v47 }
 0x244   :  { %3436 = vmatprep.mubr.f32.mxu0 %v458_v25  ;;  %3958 = vmatpush3.bf16.msra.mxu1 %v3955_v47 }
 0x245   :  { %v3959_v49 = vpack.c.bf16 %v799_v62, %v794_v45  ;;  %3970 = vmatpush3.bf16.xpose.msra.mxu0 %v3967_v39  ;;  %v3401_v57 = vpop.f32.mrb[24].mxu1 }
 0x246   :  { %v809_v13 = vadd.f32 %v3401_v57, %v4852_v56  ;;  %v803_v58 = vpop.f32.mrb[25].mxu1  ;;  %3972 = vmatprep.subr.bf16.mxu0 %v4840_v52 }
 0x247   :  { %v804_v59 = vadd.f32 %v4852_v56, %v803_v58  ;;  %3437 = vmatmul.mubr.f32.gmra.mrb[38].mxu0 %v463_v48  ;;  %3960 = vmatprep.subr.bf16.mxu1 %v3959_v49 }
 0x248   :  { %3962 = vmatpush3.bf16.msra.mxu1 %v3959_v49  ;;  %3483 = vmatprep.mubr.f32.mxu0 %v468_v55 }
 0x249   :  { %v4884_v6 = vpack.c.bf16 %v809_v13, %v804_v59  ;;  %v3404_v10 = vpop.f32.mrb[26].mxu1 }
 0x24a   :  { %v819_v39 = vadd.f32 %v3404_v10, %v4852_v56  ;;  %v813_v11 = vpop.f32.mrb[27].mxu1 }
 0x24b   :  { %v814_v12 = vadd.f32 %v4852_v56, %v813_v11  ;;  %3980 = vmatprep.subr.bf16.mxu1 %v4884_v6 }
 0x24d   :  { %v4889_v5 = vpack.c.bf16 %v819_v39, %v814_v12  ;;  %3974 = vmatpush3.bf16.xpose.msra.mxu0 %v4840_v52  ;;  %v3407_v20 = vpop.f32.mrb[28].mxu1 }
 0x24e   :  { %v829_v16 = vadd.f32 %v3407_v20, %v4852_v56  ;;  %v823_v17 = vpop.f32.mrb[29].mxu1  ;;  %3976 = vmatprep.subr.bf16.mxu0 %v4855_v14 }
 0x24f   :  { %v824_v18 = vadd.f32 %v4852_v56, %v823_v17 }
 0x251   :  { %v4895_v21 = vpack.c.bf16 %v829_v16, %v824_v18  ;;  %v3410_v23 = vpop.f32.mrb[30].mxu1 }
 0x252   :  { %v839_v0 = vadd.f32 %v3410_v23, %v4852_v56  ;;  %v833_v24 = vpop.f32.mrb[31].mxu1 }
 0x253   :  { %v834_v4 = vadd.f32 %v4852_v56, %v833_v24 }
 0x255   :  { %v4899_v61 = vpack.c.bf16 %v839_v0, %v834_v4  ;;  %3978 = vmatpush3.bf16.xpose.msra.mxu0 %v4855_v14 }
 0x25c   :  { %3484 = vmatmul.mubr.f32.vlgmr.msra.gmra.mrb[40].mxu0 %v4818_v19 }
 0x25d   :  { %3486 = vmatprep.mubr.f32.mxu0 %v4829_v32 }
 0x260   :  { %3487 = vmatmul.mubr.f32.gmra.mrb[42].mxu0 %v4825_v27 }
 0x261   :  { %3489 = vmatprep.mubr.f32.mxu0 %v4837_v46 }
 0x264   :  { %3490 = vmatmul.mubr.f32.gmra.mrb[44].mxu0 %v4833_v41 }
 0x265   :  { %3492 = vmatprep.mubr.f32.mxu0 %v4847_v8 }
 0x268   :  { %3493 = vmatmul.mubr.f32.gmra.mrb[46].mxu0 %v4843_v51 }
 0x30e   :  { %v3429_v52 = vpop.f32.mrb[32].mxu0 }
 0x30f   :  { %v909_v56 = vpop.f32.mrb[33].mxu0  ;;  %v952_v32 = vsel %vm948_vm0, %v3429_v52, -inf }
 0x310   :  { %v949_v26 = vsel %vm948_vm0, %v909_v56, -inf }
 0x311   :  { %950 = vmax.xlane.f32.xlu0 %v949_v26 }
 0x312   :  { %v3432_v14 = vpop.f32.mrb[34].mxu0 }
 0x313   :  { %v919_v19 = vpop.f32.mrb[35].mxu0  ;;  %v958_v8 = vsel %vm948_vm0, %v3432_v14, -inf }
 0x314   :  { %v955_v27 = vsel %vm948_vm0, %v919_v19, -inf }
 0x315   :  { %953 = vmax.xlane.f32.xlu0 %v952_v32  ;;  %956 = vmax.xlane.f32.xlu1 %v955_v27 }
 0x316   :  { %v4912_v46 = vpop.f32.mrb[36].mxu0 }
 0x317   :  { %v929_v41 = vpop.f32.mrb[37].mxu0  ;;  %v964_v30 = vsel %vm948_vm0, %v4912_v46, -inf }
 0x318   :  { %v961_v51 = vsel %vm948_vm0, %v929_v41, -inf }
 0x319   :  { %959 = vmax.xlane.f32.xlu1 %v958_v8  ;;  %962 = vmax.xlane.f32.xlu0 %v961_v51 }
 0x31a   :  { %v4916_v28 = vpop.f32.mrb[38].mxu0 }
 0x31b   :  { %v939_v31 = vpop.f32.mrb[39].mxu0  ;;  %v970_v50 = vsel %vm948_vm0, %v4916_v28, -inf }
 0x31c   :  { %v967_v2 = vsel %vm948_vm0, %v939_v31, -inf }
 0x31d   :  { %965 = vmax.xlane.f32.xlu1 %v964_v30  ;;  %968 = vmax.xlane.f32.xlu0 %v967_v2 }
 0x321   :  { %971 = vmax.xlane.f32.xlu1 %v970_v50 }
 0x32f   :  { %v4923_v33 = vpop.f32.mrb[40].mxu0 }
 0x330   :  { %v4925_v34 = vpop.f32.mrb[41].mxu0  ;;  %v1299_v40 = vsel %vm948_vm0, %v4923_v33, -inf }
 0x331   :  { %1300 = vmax.xlane.f32.xlu1 %v1299_v40  ;;  %v1296_v47 = vsel %vm948_vm0, %v4925_v34, -inf }
 0x332   :  { %1297 = vmax.xlane.f32.xlu0 %v1296_v47 }
 0x333   :  { %v4931_v9 = vpop.f32.mrb[42].mxu0 }
 0x334   :  { %v4933_v25 = vpop.f32.mrb[43].mxu0  ;;  %v1305_v62 = vsel %vm948_vm0, %v4931_v9, -inf }
 0x335   :  { %1306 = vmax.xlane.f32.xlu1 %v1305_v62  ;;  %v1302_v42 = vsel %vm948_vm0, %v4933_v25, -inf }
 0x336   :  { %1303 = vmax.xlane.f32.xlu0 %v1302_v42 }
 0x337   :  { %v4939_v45 = vpop.f32.mrb[44].mxu0 }
 0x338   :  { %v4941_v48 = vpop.f32.mrb[45].mxu0  ;;  %v1311_v49 = vsel %vm948_vm0, %v4939_v45, -inf }
 0x339   :  { %1312 = vmax.xlane.f32.xlu1 %v1311_v49  ;;  %v1308_v57 = vsel %vm948_vm0, %v4941_v48, -inf }
 0x33a   :  { %1309 = vmax.xlane.f32.xlu0 %v1308_v57 }
 0x33b   :  { %v4947_v55 = vpop.f32.mrb[46].mxu0 }
 0x33c   :  { %v4949_v13 = vpop.f32.mrb[47].mxu0  ;;  %v1317_v58 = vsel %vm948_vm0, %v4947_v55, -inf }
 0x33d   :  { %1318 = vmax.xlane.f32.xlu1 %v1317_v58  ;;  %v1314_v59 = vsel %vm948_vm0, %v4949_v13, -inf }
 0x33e   :  { %1315 = vmax.xlane.f32.xlu0 %v1314_v59 }
 0x39e   :  { %v951_v10 = vpop.xlane.xlu0 %950 }
 0x39f   :  { %v973_v39 = vsub.f32 %v909_v56, %v951_v10 }
 0x3a1   :  { %v981_v11 = vmul.f32 1.442695, %v973_v39 }
 0x3a2   :  { %v954_v12 = vpop.xlane.xlu0 %953  ;;  %v957_v20 = vpop.xlane.xlu1 %956 }
 0x3a3   :  { %4170 = vpow2.f32 %v981_v11  ;;  %v974_v16 = vsub.f32 %v3429_v52, %v954_v12  ;;  %v975_v17 = vsub.f32 %v919_v19, %v957_v20 }
 0x3a5   :  { %v983_v18 = vmul.f32 1.442695, %v974_v16  ;;  %v985_v23 = vmul.f32 1.442695, %v975_v17 }
 0x3a6   :  { %v960_v0 = vpop.xlane.xlu1 %959  ;;  %v963_v24 = vpop.xlane.xlu0 %962 }
 0x3a7   :  { %4172 = vpow2.f32 %v983_v18  ;;  %v976_v4 = vsub.f32 %v3432_v14, %v960_v0  ;;  %v977_v26 = vsub.f32 %v929_v41, %v963_v24 }
 0x3a8   :  { %4174 = vpow2.f32 %v985_v23 }
 0x3a9   :  { %v987_v32 = vmul.f32 1.442695, %v976_v4  ;;  %v989_v27 = vmul.f32 1.442695, %v977_v26 }
 0x3aa   :  { %v966_v8 = vpop.xlane.xlu1 %965  ;;  %v969_v51 = vpop.xlane.xlu0 %968 }
 0x3ab   :  { %4176 = vpow2.f32 %v987_v32  ;;  %v978_v56 = vsub.f32 %v4912_v46, %v966_v8  ;;  %v979_v30 = vsub.f32 %v939_v31, %v969_v51 }
 0x3ac   :  { %4178 = vpow2.f32 %v989_v27 }
 0x3ad   :  { %v4956_v2 = vpop.eup %4170  ;;  %v991_v52 = vmul.f32 1.442695, %v978_v56  ;;  %v993_v19 = vmul.f32 1.442695, %v979_v30 }
 0x3ae   :  { %v972_v50 = vpop.xlane.xlu1 %971  ;;  %v997_v40 = vsel %vm948_vm0, %v4956_v2, 0.0 }
 0x3af   :  { %4180 = vpow2.f32 %v991_v52  ;;  %v980_v14 = vsub.f32 %v4916_v28, %v972_v50  ;;  %998 = vadd.xlane.f32.xlu0 %v997_v40 }
 0x3b0   :  { %4182 = vpow2.f32 %v993_v19 }
 0x3b1   :  { %v4961_v41 = vpop.eup %4172  ;;  %v995_v47 = vmul.f32 1.442695, %v980_v14 }
 0x3b2   :  { %v4963_v62 = vpop.eup %4174  ;;  %v1000_v46 = vsel %vm948_vm0, %v4961_v41, 0.0 }
 0x3b3   :  { %4184 = vpow2.f32 %v995_v47  ;;  %1001 = vadd.xlane.f32.xlu1 %v1000_v46  ;;  %v1003_v31 = vsel %vm948_vm0, %v4963_v62, 0.0 }
 0x3b4   :  { %1004 = vadd.xlane.f32.xlu0 %v1003_v31 }
 0x3b5   :  { %v4969_v42 = vpop.eup %4176 }
 0x3b6   :  { %v4971_v49 = vpop.eup %4178  ;;  %v1006_v28 = vsel %vm948_vm0, %v4969_v42, 0.0 }
 0x3b7   :  { %1007 = vadd.xlane.f32.xlu1 %v1006_v28  ;;  %v1009_v57 = vsel %vm948_vm0, %v4971_v49, 0.0 }
 0x3b8   :  { %1010 = vadd.xlane.f32.xlu0 %v1009_v57 }
 0x3b9   :  { %v4977_v58 = vpop.eup %4180 }
 0x3ba   :  { %v4979_v59 = vpop.eup %4182  ;;  %v1012_v10 = vsel %vm948_vm0, %v4977_v58, 0.0 }
 0x3bb   :  { %1013 = vadd.xlane.f32.xlu1 %v1012_v10  ;;  %v1015_v39 = vsel %vm948_vm0, %v4979_v59, 0.0 }
 0x3bc   :  { %1016 = vadd.xlane.f32.xlu0 %v1015_v39 }
 0x3bd   :  { %v4985_v11 = vpop.eup %4184 }
 0x3be   :  { %v1301_v12 = vpop.xlane.xlu1 %1300  ;;  %v1018_v20 = vsel %vm948_vm0, %v4985_v11, 0.0 }
 0x3bf   :  { %v1321_v16 = vsub.f32 %v4923_v33, %v1301_v12  ;;  %v1298_v17 = vpop.xlane.xlu0 %1297  ;;  %1019 = vadd.xlane.f32.xlu1 %v1018_v20 }
 0x3c0   :  { %v1320_v18 = vsub.f32 %v4925_v34, %v1298_v17 }
 0x3c1   :  { %v1330_v23 = vmul.f32 1.442695, %v1321_v16 }
 0x3c2   :  { %v1328_v0 = vmul.f32 1.442695, %v1320_v18  ;;  %v1307_v24 = vpop.xlane.xlu1 %1306 }
 0x3c3   :  { %4186 = vpow2.f32 %v1330_v23  ;;  %v1323_v4 = vsub.f32 %v4931_v9, %v1307_v24  ;;  %v1304_v26 = vpop.xlane.xlu0 %1303  ;;  %v1724_v23 = vld [vmem:[#allocation6 + $0x80] sm:$0xff] }
 0x3c4   :  { %4188 = vpow2.f32 %v1328_v0  ;;  %v1322_v32 = vsub.f32 %v4933_v25, %v1304_v26  ;;  %v1725_v0 = vld [vmem:[#allocation6 + $0x88] sm:$0xff]  ;;  %v1727_v26 = vld [vmem:[#allocation6 + $0x98] sm:$0xff] }
 0x3c5   :  { %v1334_v27 = vmul.f32 1.442695, %v1323_v4  ;;  %v4027_v24 = vpack.c.bf16 %v1725_v0, %v1724_v23  ;;  %v1726_v4 = vld [vmem:[#allocation6 + $0x90] sm:$0xff] }
 0x3c6   :  { %v1332_v8 = vmul.f32 1.442695, %v1322_v32  ;;  %v1313_v51 = vpop.xlane.xlu1 %1312  ;;  %v4031_v32 = vpack.c.bf16 %v1727_v26, %v1726_v4 }
 0x3c7   :  { %4190 = vpow2.f32 %v1334_v27  ;;  %v1325_v33 = vsub.f32 %v4939_v45, %v1313_v51  ;;  %v1310_v56 = vpop.xlane.xlu0 %1309  ;;  %v1728_v27 = vld [vmem:[#allocation6 + $0xa0] sm:$0xff]  ;;  %4028 = vmatprep.subr.bf16.mxu0 %v4027_v24 }
 0x3c8   :  { %4192 = vpow2.f32 %v1332_v8  ;;  %v1324_v34 = vsub.f32 %v4941_v48, %v1310_v56  ;;  %v1729_v8 = vld [vmem:[#allocation6 + $0xa8] sm:$0xff]  ;;  %4030 = vmatpush3.bf16.msra.mxu0 %v4027_v24  ;;  %v1731_v56 = vld [vmem:[#allocation6 + $0xb8] sm:$0xff] }
 0x3c9   :  { %v1338_v30 = vmul.f32 1.442695, %v1325_v33  ;;  %4032 = vmatprep.subr.bf16.mxu0 %v4031_v32  ;;  %v4035_v51 = vpack.c.bf16 %v1729_v8, %v1728_v27  ;;  %v1730_v33 = vld [vmem:[#allocation6 + $0xb0] sm:$0xff] }
 0x3ca   :  { %v1336_v52 = vmul.f32 1.442695, %v1324_v34  ;;  %v1319_v19 = vpop.xlane.xlu1 %1318  ;;  %v4039_v34 = vpack.c.bf16 %v1731_v56, %v1730_v33 }
 0x3cb   :  { %4194 = vpow2.f32 %v1338_v30  ;;  %v1327_v9 = vsub.f32 %v4947_v55, %v1319_v19  ;;  %v1316_v50 = vpop.xlane.xlu0 %1315  ;;  %v1732_v30 = vld [vmem:[#allocation6 + $0xc0] sm:$0xff] }
 0x3cc   :  { %4196 = vpow2.f32 %v1336_v52  ;;  %v1326_v25 = vsub.f32 %v4949_v13, %v1316_v50  ;;  %4034 = vmatpush3.bf16.msra.mxu0 %v4031_v32  ;;  %v1733_v52 = vld [vmem:[#allocation6 + $0xc8] sm:$0xff] }
 0x3cd   :  { %v4997_v40 = vpop.eup %4186  ;;  %v1342_v14 = vmul.f32 1.442695, %v1327_v9  ;;  %4036 = vmatprep.subr.bf16.mxu0 %v4035_v51  ;;  %v4043_v19 = vpack.c.bf16 %v1733_v52, %v1732_v30 }
 0x3ce   :  { %v4999_v47 = vpop.eup %4188  ;;  %v1340_v45 = vmul.f32 1.442695, %v1326_v25  ;;  %v1347_v46 = vsel %vm948_vm0, %v4997_v40, 0.0 }
 0x3cf   :  { %4198 = vpow2.f32 %v1342_v14  ;;  %1348 = vadd.xlane.f32.xlu1 %v1347_v46  ;;  %v1344_v48 = vsel %vm948_vm0, %v4999_v47, 0.0 }
 0x3d0   :  { %4200 = vpow2.f32 %v1340_v45  ;;  %1345 = vadd.xlane.f32.xlu0 %v1344_v48  ;;  %4038 = vmatpush3.bf16.msra.mxu0 %v4035_v51 }
 0x3d1   :  { %v5005_v55 = vpop.eup %4190  ;;  %4040 = vmatprep.subr.bf16.mxu0 %v4039_v34 }
 0x3d2   :  { %v5007_v31 = vpop.eup %4192  ;;  %v1353_v13 = vsel %vm948_vm0, %v5005_v55, 0.0 }
 0x3d3   :  { %1354 = vadd.xlane.f32.xlu1 %v1353_v13  ;;  %v1350_v28 = vsel %vm948_vm0, %v5007_v31, 0.0 }
 0x3d4   :  { %1351 = vadd.xlane.f32.xlu0 %v1350_v28  ;;  %4042 = vmatpush3.bf16.msra.mxu0 %v4039_v34 }
 0x3d5   :  { %v5013_v57 = vpop.eup %4194  ;;  %4044 = vmatprep.subr.bf16.mxu0 %v4043_v19 }
 0x3d6   :  { %v5015_v10 = vpop.eup %4196  ;;  %v1359_v39 = vsel %vm948_vm0, %v5013_v57, 0.0 }
 0x3d7   :  { %1360 = vadd.xlane.f32.xlu1 %v1359_v39  ;;  %v1356_v12 = vsel %vm948_vm0, %v5015_v10, 0.0 }
 0x3d8   :  { %1357 = vadd.xlane.f32.xlu0 %v1356_v12  ;;  %4046 = vmatpush3.bf16.msra.mxu0 %v4043_v19 }
 0x3d9   :  { %v5021_v20 = vpop.eup %4198 }
 0x3da   :  { %v5023_v16 = vpop.eup %4200  ;;  %v1365_v17 = vsel %vm948_vm0, %v5021_v20, 0.0 }
 0x3db   :  { %1366 = vadd.xlane.f32.xlu1 %v1365_v17  ;;  %v1362_v18 = vsel %vm948_vm0, %v5023_v16, 0.0 }
 0x3dc   :  { %1363 = vadd.xlane.f32.xlu0 %v1362_v18 }
 0x43c   :  { %v999_v9 = vpop.xlane.xlu0 %998 }
 0x43d   :  { %4202 = vrcp.f32 %v999_v9 }
 0x440   :  { %v1002_v50 = vpop.xlane.xlu1 %1001 }
 0x441   :  { %4204 = vrcp.f32 %v1002_v50  ;;  %v1005_v25 = vpop.xlane.xlu0 %1004 }
 0x442   :  { %4206 = vrcp.f32 %v1005_v25 }
 0x444   :  { %v1008_v14 = vpop.xlane.xlu1 %1007 }
 0x445   :  { %4208 = vrcp.f32 %v1008_v14  ;;  %v1011_v45 = vpop.xlane.xlu0 %1010  ;;  %v2800_v14 = vld [vmem:[%s5522_s3 + $0xa0] sm:$0xff] }
 0x446   :  { %4210 = vrcp.f32 %v1011_v45  ;;  %v2801_v45 = vld [vmem:[%s5522_s3 + $0xa8] sm:$0xff] }
 0x447   :  { %v4203_v46 = vpop.eup %4202 }
 0x448   :  { %v1014_v48 = vpop.xlane.xlu1 %1013  ;;  %v1029_v13 = vmul.f32 %v4203_v46, %v4956_v2 }
 0x449   :  { %4212 = vrcp.f32 %v1014_v48  ;;  %v1017_v28 = vpop.xlane.xlu0 %1016  ;;  %v4003_v48 = vpack.c.bf16 %v2801_v45, %v2800_v14 }
 0x44a   :  { %4214 = vrcp.f32 %v1017_v28  ;;  %3455 = vmatprep.mubr.msk.f32.mxu1 %vm948_vm0, %v1029_v13  ;;  %v2802_v28 = vld [vmem:[%s5522_s3 + $0xb0] sm:$0xff] }
 0x44b   :  { %v4205_v39 = vpop.eup %4204 }
 0x44c   :  { %v4207_v12 = vpop.eup %4206  ;;  %v1030_v17 = vmul.f32 %v4205_v39, %v4961_v41  ;;  %v1020_v18 = vpop.xlane.xlu1 %1019  ;;  %v2803_v39 = vld [vmem:[%s5522_s3 + $0xb8] sm:$0xff] }
 0x44d   :  { %4216 = vrcp.f32 %v1020_v18  ;;  %v1031_v23 = vmul.f32 %v4207_v12, %v4963_v62 }
 0x44e   :  { %3456 = vmatmul.mubr.msk.f32.vlgmr.msra.gmra.mrb[32].mxu1 %vm948_vm0, %v1030_v17  ;;  %v4007_v17 = vpack.c.bf16 %v2803_v39, %v2802_v28  ;;  %v1898_v28 = vld [vmem:[#allocation8 + $0xa0] sm:$0xff]  ;;  %v1899_v39 = vld [vmem:[#allocation8 + $0xa8] sm:$0xff] }
 0x44f   :  { %v4209_v0 = vpop.eup %4208  ;;  %3982 = vmatpush3.bf16.msra.mxu1 %v4884_v6  ;;  %3458 = vmatprep.mubr.msk.f32.mxu1 %vm948_vm0, %v1031_v23  ;;  %v2804_v23 = vld [vmem:[%s5522_s3 + $0xc0] sm:$0xff] }
 0x450   :  { %v4211_v2 = vpop.eup %4210  ;;  %3984 = vmatprep.subr.bf16.mxu1 %v4889_v5  ;;  %v1032_v24 = vmul.f32 %v4209_v0, %v4969_v42  ;;  %v2796_v42 = vld [vmem:[%s5522_s3 + $0x80] sm:$0xff]  ;;  %v2805_v0 = vld [vmem:[%s5522_s3 + $0xc8] sm:$0xff] }
 0x451   :  { %v1033_v4 = vmul.f32 %v4211_v2, %v4971_v49  ;;  %v2797_v49 = vld [vmem:[%s5522_s3 + $0x88] sm:$0xff] }
 0x452   :  { %3459 = vmatmul.mubr.msk.f32.gmra.mrb[34].mxu1 %vm948_vm0, %v1032_v24  ;;  %v4011_v24 = vpack.c.bf16 %v2805_v0, %v2804_v23  ;;  %v1900_v23 = vld [vmem:[#allocation8 + $0xb0] sm:$0xff]  ;;  %v1901_v0 = vld [vmem:[#allocation8 + $0xb8] sm:$0xff] }
 0x453   :  { %v4213_v41 = vpop.eup %4212  ;;  %3986 = vmatpush3.bf16.msra.mxu1 %v4889_v5  ;;  %3461 = vmatprep.mubr.msk.f32.mxu1 %vm948_vm0, %v1033_v4  ;;  %v2806_v4 = vld [vmem:[%s5522_s3 + $0xd0] sm:$0xff] }
 0x454   :  { %v4215_v62 = vpop.eup %4214  ;;  %3988 = vmatprep.subr.bf16.mxu1 %v4895_v21  ;;  %v1034_v6 = vmul.f32 %v4213_v41, %v4977_v58  ;;  %v1734_v41 = vld [vmem:[#allocation6 + $0xd0] sm:$0xff] }
 0x455   :  { %v1035_v26 = vmul.f32 %v4215_v62, %v4979_v59  ;;  %v3995_v59 = vpack.c.bf16 %v2797_v49, %v2796_v42  ;;  %v2809_v42 = vld [vmem:[%s5522_s3 + $0xe8] sm:$0xff]  ;;  %v1736_v49 = vld [vmem:[#allocation6 + $0xe0] sm:$0xff] }
 0x456   :  { %3462 = vmatmul.mubr.msk.f32.gmra.mrb[36].mxu1 %vm948_vm0, %v1034_v6 }
 0x457   :  { %v4217_v5 = vpop.eup %4216  ;;  %3990 = vmatpush3.bf16.msra.mxu1 %v4895_v21  ;;  %3464 = vmatprep.mubr.msk.f32.mxu1 %vm948_vm0, %v1035_v26  ;;  %v2808_v26 = vld [vmem:[%s5522_s3 + $0xe0] sm:$0xff] }
 0x458   :  { %3992 = vmatprep.subr.bf16.mxu1 %v4899_v61  ;;  %v1036_v58 = vmul.f32 %v4217_v5, %v4985_v11  ;;  %v2798_v11 = vld [vmem:[%s5522_s3 + $0x90] sm:$0xff]  ;;  %v4019_v5 = vpack.c.bf16 %v2809_v42, %v2808_v26  ;;  %v1906_v26 = vld [vmem:[#allocation8 + $0xe0] sm:$0xff]  ;;  %v1907_v42 = vld [vmem:[#allocation8 + $0xe8] sm:$0xff] }
 0x45a   :  { %3465 = vmatmul.mubr.msk.f32.gmra.mrb[38].mxu1 %vm948_vm0, %v1036_v58  ;;  %v1737_v58 = vld [vmem:[#allocation6 + $0xe8] sm:$0xff] }
 0x45b   :  { %3994 = vmatpush3.bf16.msra.mxu1 %v4899_v61  ;;  %v2799_v61 = vld [vmem:[%s5522_s3 + $0x98] sm:$0xff] }
 0x45c   :  { %v1349_v32 = vpop.xlane.xlu1 %1348  ;;  %3996 = vmatprep.subr.bf16.mxu1 %v3995_v59  ;;  %v3999_v50 = vpack.c.bf16 %v2799_v61, %v2798_v11  ;;  %v1895_v11 = vld [vmem:[#allocation8 + $0x88] sm:$0xff] }
 0x45d   :  { %4218 = vrcp.f32 %v1349_v32  ;;  %v1346_v27 = vpop.xlane.xlu0 %1345  ;;  %v2810_v32 = vld [vmem:[%s5522_s3 + $0xf0] sm:$0xff] }
 0x45e   :  { %4220 = vrcp.f32 %v1346_v27  ;;  %v2811_v27 = vld [vmem:[%s5522_s3 + $0xf8] sm:$0xff] }
 0x460   :  { %v1355_v8 = vpop.xlane.xlu1 %1354 }
 0x461   :  { %4222 = vrcp.f32 %v1355_v8  ;;  %v1352_v51 = vpop.xlane.xlu0 %1351  ;;  %v1738_v8 = vld [vmem:[#allocation6 + $0xf0] sm:$0xff] }
 0x462   :  { %4224 = vrcp.f32 %v1352_v51  ;;  %v4023_v51 = vpack.c.bf16 %v2811_v27, %v2810_v32 }
 0x464   :  { %v1361_v21 = vpop.xlane.xlu1 %1360 }
 0x465   :  { %4226 = vrcp.f32 %v1361_v21  ;;  %v1358_v33 = vpop.xlane.xlu0 %1357  ;;  %v1739_v21 = vld [vmem:[#allocation6 + $0xf8] sm:$0xff] }
 0x466   :  { %4228 = vrcp.f32 %v1358_v33  ;;  %v4055_v33 = vpack.c.bf16 %v1739_v21, %v1738_v8 }
 0x467   :  { %v4219_v56 = vpop.eup %4218 }
 0x468   :  { %v4221_v34 = vpop.eup %4220  ;;  %v1367_v30 = vpop.xlane.xlu1 %1366  ;;  %v1377_v9 = vmul.f32 %v4219_v56, %v4997_v40  ;;  %v1894_v56 = vld [vmem:[#allocation8 + $0x80] sm:$0xff] }
 0x469   :  { %4230 = vrcp.f32 %v1367_v30  ;;  %v1364_v52 = vpop.xlane.xlu0 %1363  ;;  %v1376_v19 = vmul.f32 %v4221_v34, %v4999_v47  ;;  %v4059_v61 = vpack.c.bf16 %v1895_v11, %v1894_v56  ;;  %v5116_v34 = vstv %s842_s28 }
 0x46a   :  { %4232 = vrcp.f32 %v1364_v52 }
 0x46b   :  { %v4223_v25 = vpop.eup %4222  ;;  %3511 = vmatprep.mubr.msk.f32.mxu1 %vm948_vm0, %v1376_v19 }
 0x46c   :  { %v4225_v46 = vpop.eup %4224  ;;  %3512 = vmatmul.mubr.msk.f32.vlgmr.msra.gmra.mrb[40].mxu1 %vm948_vm0, %v1377_v9  ;;  %v1379_v40 = vmul.f32 %v4223_v25, %v5005_v55  ;;  %v1897_v25 = vld [vmem:[#allocation8 + $0x98] sm:$0xff] }
 0x46d   :  { %v1378_v47 = vmul.f32 %v4225_v46, %v5007_v31  ;;  %3998 = vmatpush3.bf16.msra.mxu1 %v3995_v59  ;;  %v4051_v59 = vpack.c.bf16 %v1737_v58, %v1736_v49  ;;  %v1908_v49 = vld [vmem:[#allocation8 + $0xf0] sm:$0xff] }
 0x46e   :  { %4000 = vmatprep.subr.bf16.mxu1 %v3999_v50 }
 0x46f   :  { %v4227_v13 = vpop.eup %4226  ;;  %3514 = vmatprep.mubr.msk.f32.mxu1 %vm948_vm0, %v1378_v47 }
 0x470   :  { %v4229_v12 = vpop.eup %4228  ;;  %3515 = vmatmul.mubr.msk.f32.gmra.mrb[42].mxu1 %vm948_vm0, %v1379_v40  ;;  %v1381_v55 = vmul.f32 %v4227_v13, %v5013_v57 }
 0x471   :  { %v1380_v31 = vmul.f32 %v4229_v12, %v5015_v10  ;;  %4002 = vmatpush3.bf16.msra.mxu1 %v3999_v50  ;;  %v1896_v50 = vld [vmem:[#allocation8 + $0x90] sm:$0xff] }
 0x472   :  { %4004 = vmatprep.subr.bf16.mxu1 %v4003_v48 }
 0x473   :  { %v4231_v18 = vpop.eup %4230  ;;  %3517 = vmatprep.mubr.msk.f32.mxu1 %vm948_vm0, %v1380_v31 }
 0x474   :  { %v4233_v2 = vpop.eup %4232  ;;  %3518 = vmatmul.mubr.msk.f32.gmra.mrb[44].mxu1 %vm948_vm0, %v1381_v55  ;;  %v1383_v57 = vmul.f32 %v4231_v18, %v5021_v20  ;;  %v1735_v20 = vld [vmem:[#allocation6 + $0xd8] sm:$0xff] }
 0x475   :  { %v1382_v10 = vmul.f32 %v4233_v2, %v5023_v16  ;;  %4006 = vmatpush3.bf16.msra.mxu1 %v4003_v48  ;;  %v2807_v16 = vld [vmem:[%s5522_s3 + $0xd8] sm:$0xff]  ;;  %v4047_v6 = vpack.c.bf16 %v1735_v20, %v1734_v41  ;;  %v4063_v48 = vpack.c.bf16 %v1897_v25, %v1896_v50  ;;  %v1903_v41 = vld [vmem:[#allocation8 + $0xc8] sm:$0xff]  ;;  %v1904_v20 = vld [vmem:[#allocation8 + $0xd0] sm:$0xff] }
 0x476   :  { %4008 = vmatprep.subr.bf16.mxu1 %v4007_v17  ;;  %v4015_v62 = vpack.c.bf16 %v2807_v16, %v2806_v4  ;;  %v1902_v16 = vld [vmem:[#allocation8 + $0xc0] sm:$0xff] }
 0x477   :  { %3520 = vmatprep.mubr.msk.f32.mxu1 %vm948_vm0, %v1382_v10  ;;  %4048 = vmatprep.subr.bf16.mxu0 %v4047_v6 }
 0x478   :  { %3521 = vmatmul.mubr.msk.f32.gmra.mrb[46].mxu1 %vm948_vm0, %v1383_v57  ;;  %4050 = vmatpush3.bf16.msra.mxu0 %v4047_v6  ;;  %v1905_v6 = vld [vmem:[#allocation8 + $0xd8] sm:$0xff] }
 0x479   :  { %4010 = vmatpush3.bf16.msra.mxu1 %v4007_v17  ;;  %4052 = vmatprep.subr.bf16.mxu0 %v4051_v59  ;;  %v4067_v17 = vpack.c.bf16 %v1899_v39, %v1898_v28 }
 0x47a   :  { %4012 = vmatprep.subr.bf16.mxu1 %v4011_v24 }
 0x47c   :  { %4054 = vmatpush3.bf16.msra.mxu0 %v4051_v59 }
 0x47d   :  { %4014 = vmatpush3.bf16.msra.mxu1 %v4011_v24  ;;  %4056 = vmatprep.subr.bf16.mxu0 %v4055_v33  ;;  %v4071_v24 = vpack.c.bf16 %v1901_v0, %v1900_v23 }
 0x47e   :  { %4016 = vmatprep.subr.bf16.mxu1 %v4015_v62 }
 0x480   :  { %4058 = vmatpush3.bf16.msra.mxu0 %v4055_v33 }
 0x481   :  { %4018 = vmatpush3.bf16.msra.mxu1 %v4015_v62  ;;  %v4075_v62 = vpack.c.bf16 %v1903_v41, %v1902_v16 }
 0x482   :  { %4020 = vmatprep.subr.bf16.mxu1 %v4019_v5 }
 0x485   :  { %4022 = vmatpush3.bf16.msra.mxu1 %v4019_v5  ;;  %v1909_v5 = vld [vmem:[#allocation8 + $0xf8] sm:$0xff] }
 0x486   :  { %4024 = vmatprep.subr.bf16.mxu1 %v4023_v51  ;;  %v4087_v58 = vpack.c.bf16 %v1909_v5, %v1908_v49 }
 0x489   :  { %4026 = vmatpush3.bf16.msra.mxu1 %v4023_v51 }
 0x48a   :  { %4060 = vmatprep.subr.bf16.mxu1 %v4059_v61 }
 0x521   :  { %v3457_v30 = vpop.f32.mrb[32].mxu1 }
 0x522   :  { %v1168_v52 = vmul.f32 %v3457_v30, %v5116_v34  ;;  %v1127_v19 = vpop.f32.mrb[33].mxu1 }
 0x523   :  { %v1167_v9 = vmul.f32 %v5116_v34, %v1127_v19 }
 0x524   :  { %v5124_v46 = vadd.f32 %v1168_v52, %v4678_v37 }
 0x525   :  { %v5121_v14 = vadd.f32 %v1167_v9, %v4675_v35  ;;  %v3460_v45 = vpop.f32.mrb[34].mxu1 }
 0x526   :  { %v1170_v47 = vmul.f32 %v3460_v45, %v5116_v34  ;;  %v1137_v40 = vpop.f32.mrb[35].mxu1 }
 0x527   :  { %v1169_v13 = vmul.f32 %v5116_v34, %v1137_v40  ;;  %3555 = vmatprep.mubr.f32.mxu1 %v5121_v14  ;;  %3611 = vmatprep.mubr.f32.mxu0 %v5121_v14 }
 0x528   :  { %3556 = vmatmul.mubr.f32.vlgmr.msra.gmra.mrb[48].mxu1 %v5124_v46  ;;  %3612 = vmatmul.mubr.f32.vlgmr.msra.gmra.mrb[48].mxu0 %v5124_v46  ;;  %v5136_v12 = vadd.f32 %v1170_v47, %v4685_v43 }
 0x529   :  { %v5133_v35 = vadd.f32 %v1169_v13, %v4690_v44  ;;  %v3463_v37 = vpop.f32.mrb[36].mxu1  ;;  %4062 = vmatpush3.bf16.msra.mxu1 %v4059_v61 }
 0x52a   :  { %v1172_v31 = vmul.f32 %v3463_v37, %v5116_v34  ;;  %v1147_v55 = vpop.f32.mrb[37].mxu1  ;;  %4064 = vmatprep.subr.bf16.mxu1 %v4063_v48 }
 0x52b   :  { %v1171_v18 = vmul.f32 %v5116_v34, %v1147_v55  ;;  %3558 = vmatprep.mubr.f32.mxu1 %v5133_v35  ;;  %3614 = vmatprep.mubr.f32.mxu0 %v5133_v35 }
 0x52c   :  { %3559 = vmatmul.mubr.f32.gmra.mrb[50].mxu1 %v5136_v12  ;;  %3615 = vmatmul.mubr.f32.gmra.mrb[50].mxu0 %v5136_v12  ;;  %v5148_v2 = vadd.f32 %v1172_v31, %v4697_v53 }
 0x52d   :  { %v5145_v43 = vadd.f32 %v1171_v18, %v4702_v54  ;;  %v3466_v44 = vpop.f32.mrb[38].mxu1  ;;  %4066 = vmatpush3.bf16.msra.mxu1 %v4063_v48 }
 0x52e   :  { %v1174_v10 = vmul.f32 %v3466_v44, %v5116_v34  ;;  %v1157_v57 = vpop.f32.mrb[39].mxu1  ;;  %4068 = vmatprep.subr.bf16.mxu1 %v4067_v17 }
 0x52f   :  { %v1173_v4 = vmul.f32 %v5116_v34, %v1157_v57  ;;  %3561 = vmatprep.mubr.f32.mxu1 %v5145_v43  ;;  %3617 = vmatprep.mubr.f32.mxu0 %v5145_v43 }
 0x530   :  { %3562 = vmatmul.mubr.f32.gmra.mrb[52].mxu1 %v5148_v2  ;;  %3618 = vmatmul.mubr.f32.gmra.mrb[52].mxu0 %v5148_v2  ;;  %v5160_v54 = vadd.f32 %v1174_v10, %v4709_v7  ;;  %v4083_v7 = vpack.c.bf16 %v1907_v42, %v1906_v26 }
 0x531   :  { %v5157_v53 = vadd.f32 %v1173_v4, %v4714_v60  ;;  %4070 = vmatpush3.bf16.msra.mxu1 %v4067_v17  ;;  %v4079_v60 = vpack.c.bf16 %v1905_v6, %v1904_v20 }
 0x532   :  { %4072 = vmatprep.subr.bf16.mxu1 %v4071_v24 }
 0x533   :  { %3564 = vmatprep.mubr.f32.mxu1 %v5157_v53  ;;  %3620 = vmatprep.mubr.f32.mxu0 %v5157_v53 }
 0x534   :  { %3565 = vmatmul.mubr.f32.gmra.mrb[54].mxu1 %v5160_v54  ;;  %3621 = vmatmul.mubr.f32.gmra.mrb[54].mxu0 %v5160_v54 }
 0x535   :  { %4074 = vmatpush3.bf16.msra.mxu1 %v4071_v24 }
 0x536   :  { %4076 = vmatprep.subr.bf16.mxu1 %v4075_v62 }
 0x539   :  { %4078 = vmatpush3.bf16.msra.mxu1 %v4075_v62 }
 0x53a   :  { %4080 = vmatprep.subr.bf16.mxu1 %v4079_v60 }
 0x53d   :  { %4082 = vmatpush3.bf16.msra.mxu1 %v4079_v60 }
 0x53e   :  { %4084 = vmatprep.subr.bf16.mxu1 %v4083_v7 }
 0x53f   :  { %v3513_v59 = vpop.f32.mrb[40].mxu1 }
 0x540   :  { %v1514_v32 = vmul.f32 %v3513_v59, %v5116_v34  ;;  %v1474_v27 = vpop.f32.mrb[41].mxu1 }
 0x541   :  { %v1513_v8 = vmul.f32 %v1474_v27, %v5116_v34  ;;  %4086 = vmatpush3.bf16.msra.mxu1 %v4083_v7 }
 0x542   :  { %4088 = vmatprep.subr.bf16.mxu1 %v4087_v58  ;;  %v5172_v33 = vadd.f32 %v1514_v32, %v4721_v15 }
 0x543   :  { %v5169_v51 = vadd.f32 %v1513_v8, %v4726_v63  ;;  %v3516_v21 = vpop.f32.mrb[42].mxu1 }
 0x544   :  { %v1516_v56 = vmul.f32 %v3516_v21, %v5116_v34  ;;  %v1484_v11 = vpop.f32.mrb[43].mxu1 }
 0x545   :  { %v1515_v61 = vmul.f32 %v1484_v11, %v5116_v34  ;;  %3567 = vmatprep.mubr.f32.mxu1 %v5169_v51  ;;  %3623 = vmatprep.mubr.f32.mxu0 %v5169_v51 }
 0x546   :  { %3568 = vmatmul.mubr.f32.gmra.mrb[56].mxu1 %v5172_v33  ;;  %3624 = vmatmul.mubr.f32.gmra.mrb[56].mxu0 %v5172_v33  ;;  %v5184_v15 = vadd.f32 %v1516_v56, %v4733_v22 }
 0x547   :  { %v5181_v63 = vadd.f32 %v1515_v61, %v4738_v1  ;;  %v3519_v30 = vpop.f32.mrb[44].mxu1  ;;  %4090 = vmatpush3.bf16.msra.mxu1 %v4087_v58 }
 0x548   :  { %v1518_v52 = vmul.f32 %v3519_v30, %v5116_v34  ;;  %v1494_v19 = vpop.f32.mrb[45].mxu1 }
 0x549   :  { %v1517_v9 = vmul.f32 %v1494_v19, %v5116_v34  ;;  %3570 = vmatprep.mubr.f32.mxu1 %v5181_v63  ;;  %3626 = vmatprep.mubr.f32.mxu0 %v5181_v63 }
 0x54a   :  { %3571 = vmatmul.mubr.f32.gmra.mrb[58].mxu1 %v5184_v15  ;;  %3627 = vmatmul.mubr.f32.gmra.mrb[58].mxu0 %v5184_v15  ;;  %v5196_v22 = vadd.f32 %v1518_v52, %v4745_v29  ;;  %v5233_v29 = vld [vmem:[%s5525_s6 + $0x1] ss:$0 sm:$0xff] }
 0x54b   :  { %v5193_v1 = vadd.f32 %v1517_v9, %v4750_v3  ;;  %v3522_v50 = vpop.f32.mrb[46].mxu1 }
 0x54c   :  { %v1520_v25 = vmul.f32 %v3522_v50, %v5116_v34  ;;  %v1504_v45 = vpop.f32.mrb[47].mxu1 }
 0x54d   :  { %v1519_v47 = vmul.f32 %v1504_v45, %v5116_v34  ;;  %3573 = vmatprep.mubr.f32.mxu1 %v5193_v1  ;;  %3629 = vmatprep.mubr.f32.mxu0 %v5193_v1 }
 0x54e   :  { %3574 = vmatmul.mubr.f32.gmra.mrb[60].mxu1 %v5196_v22  ;;  %3630 = vmatmul.mubr.f32.gmra.mrb[60].mxu0 %v5196_v22  ;;  %v5208_v40 = vadd.f32 %v1520_v25, %v4757_v36  ;;  %v5238_v36 = vld [vmem:[%s5523_s4 + $0x1] ss:$0 sm:$0xff] }
 0x54f   :  { %v5205_v3 = vadd.f32 %v1519_v47, %v4762_v38 }
 0x551   :  { %3576 = vmatprep.mubr.f32.mxu1 %v5205_v3  ;;  %3632 = vmatprep.mubr.f32.mxu0 %v5205_v3 }
 0x552   :  { %3577 = vmatmul.mubr.f32.gmra.mrb[62].mxu1 %v5208_v40  ;;  %3633 = vmatmul.mubr.f32.gmra.mrb[62].mxu0 %v5208_v40 }
 0x553   :  { %3667 = vmatprep.mubr.f32.mxu1 %v5121_v14 }
 0x556   :  { %3668 = vmatmul.mubr.f32.vlgmr.msra.gmra.mrb[64].mxu1 %v5124_v46 }
 0x557   :  { %3670 = vmatprep.mubr.f32.mxu1 %v5133_v35 }
 0x55a   :  { %3671 = vmatmul.mubr.f32.gmra.mrb[66].mxu1 %v5136_v12 }
 0x55b   :  { %3673 = vmatprep.mubr.f32.mxu1 %v5145_v43 }
 0x55e   :  { %3674 = vmatmul.mubr.f32.gmra.mrb[68].mxu1 %v5148_v2 }
 0x55f   :  { %3676 = vmatprep.mubr.f32.mxu1 %v5157_v53 }
 0x562   :  { %3677 = vmatmul.mubr.f32.gmra.mrb[70].mxu1 %v5160_v54 }
 0x563   :  { %3679 = vmatprep.mubr.f32.mxu1 %v5169_v51 }
 0x566   :  { %3680 = vmatmul.mubr.f32.gmra.mrb[72].mxu1 %v5172_v33 }
 0x567   :  { %3682 = vmatprep.mubr.f32.mxu1 %v5181_v63 }
 0x56a   :  { %3683 = vmatmul.mubr.f32.gmra.mrb[74].mxu1 %v5184_v15 }
 0x56b   :  { %3685 = vmatprep.mubr.f32.mxu1 %v5193_v1 }
 0x56e   :  { %3686 = vmatmul.mubr.f32.gmra.mrb[76].mxu1 %v5196_v22 }
 0x56f   :  { %3688 = vmatprep.mubr.f32.mxu1 %v5205_v3 }
 0x572   :  { %3689 = vmatmul.mubr.f32.gmra.mrb[78].mxu1 %v5208_v40 }
 0x5fb   :  { %v3557_v38 = vpop.f32.mrb[48].mxu1  ;;  %v3613_v34 = vpop.f32.mrb[48].mxu0 }
 0x5fc   :  { %v1820_v48 = vadd.f32 %v3613_v34, %v5233_v29  ;;  %v1644_v13 = vpop.f32.mrb[49].mxu1  ;;  %v1814_v28 = vpop.f32.mrb[49].mxu0  ;;  %v1650_v45 = vadd.f32 %v3557_v38, %v5238_v36 }
 0x5fd   :  { %v1645_v39 = vadd.f32 %v5238_v36, %v1644_v13  ;;  %v1815_v37 = vadd.f32 %v5233_v29, %v1814_v28 }
 0x5ff   :  { %v4091_v31 = vpack.c.bf16 %v1820_v48, %v1815_v37  ;;  %v3560_v55 = vpop.f32.mrb[50].mxu1  ;;  %v3616_v17 = vpop.f32.mrb[50].mxu0  ;;  %3707 = vmatprep.mubr.f32.mxu0 %v1645_v39 }
 0x600   :  { %v1830_v18 = vadd.f32 %v3616_v17, %v5233_v29  ;;  %v1654_v23 = vpop.f32.mrb[51].mxu1  ;;  %v1824_v0 = vpop.f32.mrb[51].mxu0 }
 0x601   :  { %v1825_v44 = vadd.f32 %v5233_v29, %v1824_v0  ;;  %4092 = vmatprep.subr.bf16.mxu0 %v4091_v31  ;;  %v1655_v48 = vadd.f32 %v5238_v36, %v1654_v23 }
 0x602   :  { %4094 = vmatpush3.bf16.xpose.msra.mxu0 %v4091_v31 }
 0x603   :  { %v4095_v10 = vpack.c.bf16 %v1830_v18, %v1825_v44  ;;  %v5245_v57 = vpop.f32.mrb[52].mxu1  ;;  %v3619_v24 = vpop.f32.mrb[52].mxu0  ;;  %v1660_v18 = vadd.f32 %v3560_v55, %v5238_v36 }
 0x604   :  { %v1840_v4 = vadd.f32 %v3619_v24, %v5233_v29  ;;  %v1664_v16 = vpop.f32.mrb[53].mxu1  ;;  %v1834_v41 = vpop.f32.mrb[53].mxu0  ;;  %v1670_v55 = vadd.f32 %v5245_v57, %v5238_v36 }
 0x605   :  { %v1835_v62 = vadd.f32 %v5233_v29, %v1834_v41  ;;  %4096 = vmatprep.subr.bf16.mxu0 %v4095_v10  ;;  %v1665_v44 = vadd.f32 %v5238_v36, %v1664_v16 }
 0x607   :  { %v4099_v20 = vpack.c.bf16 %v1840_v4, %v1835_v62  ;;  %v5249_v6 = vpop.f32.mrb[54].mxu1  ;;  %v3622_v60 = vpop.f32.mrb[54].mxu0 }
 0x608   :  { %v1850_v26 = vadd.f32 %v3622_v60, %v5233_v29  ;;  %v1674_v42 = vpop.f32.mrb[55].mxu1  ;;  %v1844_v7 = vpop.f32.mrb[55].mxu0 }
 0x609   :  { %v1845_v49 = vadd.f32 %v5233_v29, %v1844_v7  ;;  %v5292_v7 = vld [vmem:[%s5527_s8 + $0x1] ss:$0 sm:$0xff]  ;;  %s2818_s8 = sld [smem:[#allocation9 + $0x1]] }
 0x60a   :  { %4098 = vmatpush3.bf16.xpose.msra.mxu0 %v4095_v10 }
 0x60b   :  { %v4103_v5 = vpack.c.bf16 %v1850_v26, %v1845_v49  ;;  %4100 = vmatprep.subr.bf16.mxu0 %v4099_v20  ;;  %v1675_v49 = vadd.f32 %v5238_v36, %v1674_v42 }
 0x612   :  { %4102 = vmatpush3.bf16.xpose.msra.mxu0 %v4099_v20 }
 0x613   :  { %4104 = vmatprep.subr.bf16.mxu0 %v4103_v5 }
 0x619   :  { %v3569_v58 = vpop.f32.mrb[56].mxu1  ;;  %v3625_v59 = vpop.f32.mrb[56].mxu0 }
 0x61a   :  { %v5254_v32 = vadd.f32 %v3569_v58, %v5238_v36  ;;  %v1860_v27 = vadd.f32 %v3625_v59, %v5233_v29  ;;  %v1684_v8 = vpop.f32.mrb[57].mxu1  ;;  %v1854_v21 = vpop.f32.mrb[57].mxu0  ;;  %4106 = vmatpush3.bf16.xpose.msra.mxu0 %v4103_v5 }
 0x61b   :  { %v1685_v56 = vadd.f32 %v5238_v36, %v1684_v8  ;;  %v1855_v11 = vadd.f32 %v5233_v29, %v1854_v21 }
 0x61d   :  { %v4123_v61 = vpack.c.bf16 %v1860_v27, %v1855_v11  ;;  %v3572_v30 = vpop.f32.mrb[58].mxu1  ;;  %v3628_v52 = vpop.f32.mrb[58].mxu0  ;;  %3763 = vmatprep.mubr.f32.mxu1 %v1685_v56  ;;  %v1680_v27 = vadd.f32 %v5249_v6, %v5238_v36 }
 0x61e   :  { %v5260_v19 = vadd.f32 %v3572_v30, %v5238_v36  ;;  %v1870_v9 = vadd.f32 %v3628_v52, %v5233_v29  ;;  %v1694_v50 = vpop.f32.mrb[59].mxu1  ;;  %v1864_v25 = vpop.f32.mrb[59].mxu0 }
 0x61f   :  { %v5265_v47 = vadd.f32 %v5238_v36, %v1694_v50  ;;  %v1865_v34 = vadd.f32 %v5233_v29, %v1864_v25  ;;  %4124 = vmatprep.subr.bf16.mxu1 %v4123_v61 }
 0x620   :  { %4126 = vmatpush3.bf16.xpose.msra.mxu1 %v4123_v61 }
 0x621   :  { %v4127_v13 = vpack.c.bf16 %v1870_v9, %v1865_v34  ;;  %v3575_v28 = vpop.f32.mrb[60].mxu1  ;;  %v3631_v39 = vpop.f32.mrb[60].mxu0  ;;  %3708 = vmatmul.mubr.f32.vlgmr.msra.gmra.mrb[64].mxu0 %v1650_v45 }
 0x622   :  { %v5270_v37 = vadd.f32 %v3575_v28, %v5238_v36  ;;  %v1880_v31 = vadd.f32 %v3631_v39, %v5233_v29  ;;  %v1704_v17 = vpop.f32.mrb[61].mxu1  ;;  %v1874_v38 = vpop.f32.mrb[61].mxu0  ;;  %3710 = vmatprep.mubr.f32.mxu0 %v1655_v48 }
 0x623   :  { %v5275_v0 = vadd.f32 %v5238_v36, %v1704_v17  ;;  %v1875_v23 = vadd.f32 %v5233_v29, %v1874_v38  ;;  %4128 = vmatprep.subr.bf16.mxu1 %v4127_v13 }
 0x625   :  { %v4131_v10 = vpack.c.bf16 %v1880_v31, %v1875_v23  ;;  %v3578_v24 = vpop.f32.mrb[62].mxu1  ;;  %v3634_v4 = vpop.f32.mrb[62].mxu0  ;;  %3711 = vmatmul.mubr.f32.gmra.mrb[66].mxu0 %v1660_v18 }
 0x626   :  { %v5280_v41 = vadd.f32 %v3578_v24, %v5238_v36  ;;  %v1890_v62 = vadd.f32 %v3634_v4, %v5233_v29  ;;  %v1714_v20 = vpop.f32.mrb[63].mxu1  ;;  %v1884_v60 = vpop.f32.mrb[63].mxu0  ;;  %3713 = vmatprep.mubr.f32.mxu0 %v1665_v44 }
 0x627   :  { %v5286_v26 = vadd.f32 %v5238_v36, %v1714_v20  ;;  %v1885_v16 = vadd.f32 %v5233_v29, %v1884_v60 }
 0x628   :  { %4130 = vmatpush3.bf16.xpose.msra.mxu1 %v4127_v13 }
 0x629   :  { %v4135_v5 = vpack.c.bf16 %v1890_v62, %v1885_v16  ;;  %v3669_v58 = vpop.f32.mrb[64].mxu1  ;;  %4132 = vmatprep.subr.bf16.mxu1 %v4131_v10  ;;  %3714 = vmatmul.mubr.f32.gmra.mrb[68].mxu0 %v1670_v55 }
 0x62a   :  { %v1990_v59 = vadd.f32 %v3669_v58, %v5292_v7  ;;  %v1984_v57 = vpop.f32.mrb[65].mxu1  ;;  %3716 = vmatprep.mubr.f32.mxu0 %v1675_v49 }
 0x62b   :  { %v1985_v29 = vadd.f32 %v5292_v7, %v1984_v57 }
 0x62d   :  { %v4107_v8 = vpack.c.bf16 %v1990_v59, %v1985_v29  ;;  %v3672_v21 = vpop.f32.mrb[66].mxu1  ;;  %3717 = vmatmul.mubr.f32.gmra.mrb[70].mxu0 %v1680_v27 }
 0x62e   :  { %v2000_v56 = vadd.f32 %v3672_v21, %v5292_v7  ;;  %v1994_v42 = vpop.f32.mrb[67].mxu1 }
 0x62f   :  { %v1995_v11 = vadd.f32 %v5292_v7, %v1994_v42  ;;  %4108 = vmatprep.subr.bf16.mxu0 %v4107_v8 }
 0x630   :  { %4110 = vmatpush3.bf16.msra.mxu0 %v4107_v8  ;;  %4134 = vmatpush3.bf16.xpose.msra.mxu1 %v4131_v10 }
 0x631   :  { %v4111_v61 = vpack.c.bf16 %v2000_v56, %v1995_v11  ;;  %v3675_v30 = vpop.f32.mrb[68].mxu1  ;;  %4136 = vmatprep.subr.bf16.mxu1 %v4135_v5 }
 0x632   :  { %v2010_v52 = vadd.f32 %v3675_v30, %v5292_v7  ;;  %v2004_v9 = vpop.f32.mrb[69].mxu1 }
 0x633   :  { %v2005_v36 = vadd.f32 %v5292_v7, %v2004_v9  ;;  %4112 = vmatprep.subr.bf16.mxu0 %v4111_v61 }
 0x634   :  { %4114 = vmatpush3.bf16.msra.mxu0 %v4111_v61 }
 0x635   :  { %v4115_v6 = vpack.c.bf16 %v2010_v52, %v2005_v36  ;;  %v3678_v50 = vpop.f32.mrb[70].mxu1 }
 0x636   :  { %v2020_v25 = vadd.f32 %v3678_v50, %v5292_v7  ;;  %v2014_v45 = vpop.f32.mrb[71].mxu1 }
 0x637   :  { %v2015_v34 = vadd.f32 %v5292_v7, %v2014_v45  ;;  %4116 = vmatprep.subr.bf16.mxu0 %v4115_v6 }
 0x638   :  { %4118 = vmatpush3.bf16.msra.mxu0 %v4115_v6  ;;  %4138 = vmatpush3.bf16.xpose.msra.mxu1 %v4135_v5 }
 0x639   :  { %v4119_v48 = vpack.c.bf16 %v2020_v25, %v2015_v34  ;;  %v3681_v13 = vpop.f32.mrb[72].mxu1 }
 0x63a   :  { %v2030_v28 = vadd.f32 %v3681_v13, %v5292_v7  ;;  %v2024_v39 = vpop.f32.mrb[73].mxu1 }
 0x63b   :  { %v2025_v31 = vadd.f32 %v5292_v7, %v2024_v39  ;;  %4120 = vmatprep.subr.bf16.mxu0 %v4119_v48 }
 0x63c   :  { %4122 = vmatpush3.bf16.msra.mxu0 %v4119_v48 }
 0x63d   :  { %v5307_v17 = vpack.c.bf16 %v2030_v28, %v2025_v31  ;;  %v3684_v38 = vpop.f32.mrb[74].mxu1 }
 0x63e   :  { %v2040_v18 = vadd.f32 %v3684_v38, %v5292_v7  ;;  %v2034_v23 = vpop.f32.mrb[75].mxu1 }
 0x63f   :  { %v2035_v44 = vadd.f32 %v5292_v7, %v2034_v23  ;;  %3764 = vmatmul.mubr.f32.vlgmr.msra.gmra.mrb[80].mxu1 %v5254_v32  ;;  %4140 = vmatprep.subr.bf16.mxu0 %v5307_v17 }
 0x640   :  { %4155 = vmatprep.subr.bf16.mxu1 %v5307_v17  ;;  %3766 = vmatprep.mubr.f32.mxu1 %v5265_v47 }
 0x641   :  { %v5315_v10 = vpack.c.bf16 %v2040_v18, %v2035_v44  ;;  %4159 = vmatpush3.bf16.msra.mxu1 %v5307_v17  ;;  %v3687_v24 = vpop.f32.mrb[76].mxu1 }
 0x642   :  { %v2050_v4 = vadd.f32 %v3687_v24, %v5292_v7  ;;  %v2044_v62 = vpop.f32.mrb[77].mxu1 }
 0x643   :  { %v2045_v20 = vadd.f32 %v5292_v7, %v2044_v62  ;;  %3767 = vmatmul.mubr.f32.gmra.mrb[82].mxu1 %v5260_v19  ;;  %4156 = vmatprep.subr.bf16.mxu1 %v5315_v10 }
 0x644   :  { %3769 = vmatprep.mubr.f32.mxu1 %v5275_v0 }
 0x645   :  { %v5323_v32 = vpack.c.bf16 %v2050_v4, %v2045_v20  ;;  %4160 = vmatpush3.bf16.msra.mxu1 %v5315_v10  ;;  %v3690_v47 = vpop.f32.mrb[78].mxu1 }
 0x646   :  { %v2060_v60 = vadd.f32 %v3690_v47, %v5292_v7  ;;  %v2054_v55 = vpop.f32.mrb[79].mxu1 }
 0x647   :  { %v2055_v16 = vadd.f32 %v5292_v7, %v2054_v55  ;;  %3770 = vmatmul.mubr.f32.gmra.mrb[84].mxu1 %v5270_v37  ;;  %4157 = vmatprep.subr.bf16.mxu1 %v5323_v32 }
 0x648   :  { %3772 = vmatprep.mubr.f32.mxu1 %v5286_v26 }
 0x649   :  { %v5331_v19 = vpack.c.bf16 %v2060_v60, %v2055_v16  ;;  %4161 = vmatpush3.bf16.msra.mxu1 %v5323_v32 }
 0x64b   :  { %3773 = vmatmul.mubr.f32.gmra.mrb[86].mxu1 %v5280_v41  ;;  %4158 = vmatprep.subr.bf16.mxu1 %v5331_v19 }
 0x64d   :  { %4162 = vmatpush3.bf16.msra.mxu1 %v5331_v19 }
 0x6f4   :  { %v3709_v0 = vpop.f32.mrb[64].mxu0 }
 0x6f5   :  { %v2130_v49 = vpop.f32.mrb[65].mxu0  ;;  %v2172_v7 = vsel %vm948_vm0, %v3709_v0, -inf }
 0x6f6   :  { %2173 = vmax.xlane.f32.xlu1 %v2172_v7  ;;  %v2169_v37 = vsel %vm948_vm0, %v2130_v49, -inf }
 0x6f7   :  { %2170 = vmax.xlane.f32.xlu0 %v2169_v37 }
 0x6f8   :  { %v3712_v5 = vpop.f32.mrb[66].mxu0 }
 0x6f9   :  { %v2140_v26 = vpop.f32.mrb[67].mxu0  ;;  %v2178_v58 = vsel %vm948_vm0, %v3712_v5, -inf }
 0x6fa   :  { %2179 = vmax.xlane.f32.xlu1 %v2178_v58  ;;  %v2175_v59 = vsel %vm948_vm0, %v2140_v26, -inf }
 0x6fb   :  { %2176 = vmax.xlane.f32.xlu0 %v2175_v59 }
 0x6fc   :  { %v3715_v41 = vpop.f32.mrb[68].mxu0 }
 0x6fd   :  { %v2150_v57 = vpop.f32.mrb[69].mxu0  ;;  %v2184_v27 = vsel %vm948_vm0, %v3715_v41, -inf }
 0x6fe   :  { %2185 = vmax.xlane.f32.xlu1 %v2184_v27  ;;  %v2181_v29 = vsel %vm948_vm0, %v2150_v57, -inf }
 0x6ff   :  { %2182 = vmax.xlane.f32.xlu0 %v2181_v29 }
 0x700   :  { %v3718_v8 = vpop.f32.mrb[70].mxu0 }
 0x701   :  { %v2160_v21 = vpop.f32.mrb[71].mxu0  ;;  %v2190_v56 = vsel %vm948_vm0, %v3718_v8, -inf }
 0x702   :  { %2191 = vmax.xlane.f32.xlu1 %v2190_v56  ;;  %v2187_v42 = vsel %vm948_vm0, %v2160_v21, -inf }
 0x703   :  { %2188 = vmax.xlane.f32.xlu0 %v2187_v42 }
 0x712   :  { %v5345_v11 = vpop.f32.mrb[80].mxu1 }
 0x713   :  { %v5347_v61 = vpop.f32.mrb[81].mxu1  ;;  %v2519_v30 = vsel %vm948_vm0, %v5345_v11, -inf }
 0x714   :  { %2520 = vmax.xlane.f32.xlu0 %v2519_v30  ;;  %v2516_v36 = vsel %vm948_vm0, %v5347_v61, -inf }
 0x716   :  { %v5351_v52 = vpop.f32.mrb[82].mxu1 }
 0x717   :  { %v5353_v9 = vpop.f32.mrb[83].mxu1  ;;  %v2525_v13 = vsel %vm948_vm0, %v5351_v52, -inf }
 0x718   :  { %2517 = vmax.xlane.f32.xlu0 %v2516_v36  ;;  %v2522_v25 = vsel %vm948_vm0, %v5353_v9, -inf }
 0x71a   :  { %v5357_v6 = vpop.f32.mrb[84].mxu1 }
 0x71b   :  { %v5359_v50 = vpop.f32.mrb[85].mxu1  ;;  %v2531_v45 = vsel %vm948_vm0, %v5357_v6, -inf }
 0x71c   :  { %2523 = vmax.xlane.f32.xlu0 %v2522_v25  ;;  %2532 = vmax.xlane.f32.xlu1 %v2531_v45  ;;  %v2528_v28 = vsel %vm948_vm0, %v5359_v50, -inf }
 0x71e   :  { %v5365_v34 = vpop.f32.mrb[86].mxu1 }
 0x71f   :  { %v5367_v48 = vpop.f32.mrb[87].mxu1  ;;  %v2537_v31 = vsel %vm948_vm0, %v5365_v34, -inf }
 0x720   :  { %2526 = vmax.xlane.f32.xlu0 %v2525_v13  ;;  %2529 = vmax.xlane.f32.xlu1 %v2528_v28  ;;  %v2534_v39 = vsel %vm948_vm0, %v5367_v48, -inf }
 0x724   :  { %2535 = vmax.xlane.f32.xlu1 %v2534_v39 }
 0x728   :  { %2538 = vmax.xlane.f32.xlu1 %v2537_v31 }
 0x783   :  { %v2174_v38 = vpop.xlane.xlu1 %2173 }
 0x784   :  { %v2194_v18 = vsub.f32 %v3709_v0, %v2174_v38  ;;  %v2171_v23 = vpop.xlane.xlu0 %2170 }
 0x785   :  { %v2193_v44 = vsub.f32 %v2130_v49, %v2171_v23 }
 0x786   :  { %v2203_v24 = vmul.f32 1.442695, %v2194_v18 }
 0x787   :  { %v2201_v4 = vmul.f32 1.442695, %v2193_v44  ;;  %v2180_v62 = vpop.xlane.xlu1 %2179 }
 0x788   :  { %4234 = vpow2.f32 %v2203_v24  ;;  %v2196_v20 = vsub.f32 %v3712_v5, %v2180_v62  ;;  %v2177_v47 = vpop.xlane.xlu0 %2176 }
 0x789   :  { %4236 = vpow2.f32 %v2201_v4  ;;  %v2195_v60 = vsub.f32 %v2140_v26, %v2177_v47 }
 0x78a   :  { %v2207_v55 = vmul.f32 1.442695, %v2196_v20 }
 0x78b   :  { %v2205_v16 = vmul.f32 1.442695, %v2195_v60  ;;  %v2186_v7 = vpop.xlane.xlu1 %2185 }
 0x78c   :  { %4238 = vpow2.f32 %v2207_v55  ;;  %v2198_v37 = vsub.f32 %v3715_v41, %v2186_v7  ;;  %v2183_v58 = vpop.xlane.xlu0 %2182 }
 0x78d   :  { %4240 = vpow2.f32 %v2205_v16  ;;  %v2197_v59 = vsub.f32 %v2150_v57, %v2183_v58 }
 0x78e   :  { %v2211_v27 = vmul.f32 1.442695, %v2198_v37 }
 0x78f   :  { %v2209_v0 = vmul.f32 1.442695, %v2197_v59  ;;  %v2192_v29 = vpop.xlane.xlu1 %2191 }
 0x790   :  { %4242 = vpow2.f32 %v2211_v27  ;;  %v2200_v49 = vsub.f32 %v3718_v8, %v2192_v29  ;;  %v2189_v56 = vpop.xlane.xlu0 %2188 }
 0x791   :  { %4244 = vpow2.f32 %v2209_v0  ;;  %v2199_v42 = vsub.f32 %v2160_v21, %v2189_v56 }
 0x792   :  { %v5377_v5 = vpop.eup %4234  ;;  %v2215_v30 = vmul.f32 1.442695, %v2200_v49 }
 0x793   :  { %v5379_v26 = vpop.eup %4236  ;;  %v2213_v36 = vmul.f32 1.442695, %v2199_v42  ;;  %v2220_v41 = vsel %vm948_vm0, %v5377_v5, 0.0 }
 0x794   :  { %4246 = vpow2.f32 %v2215_v30  ;;  %2221 = vadd.xlane.f32.xlu1 %v2220_v41  ;;  %v2217_v57 = vsel %vm948_vm0, %v5379_v26, 0.0 }
 0x795   :  { %4248 = vpow2.f32 %v2213_v36  ;;  %2218 = vadd.xlane.f32.xlu0 %v2217_v57 }
 0x796   :  { %v5385_v8 = vpop.eup %4238 }
 0x797   :  { %v5387_v25 = vpop.eup %4240  ;;  %v2226_v21 = vsel %vm948_vm0, %v5385_v8, 0.0 }
 0x798   :  { %2227 = vadd.xlane.f32.xlu1 %v2226_v21  ;;  %v2223_v45 = vsel %vm948_vm0, %v5387_v25, 0.0 }
 0x799   :  { %2224 = vadd.xlane.f32.xlu0 %v2223_v45 }
 0x79a   :  { %v5393_v13 = vpop.eup %4242 }
 0x79b   :  { %v5395_v28 = vpop.eup %4244  ;;  %v2232_v39 = vsel %vm948_vm0, %v5393_v13, 0.0 }
 0x79c   :  { %2233 = vadd.xlane.f32.xlu1 %v2232_v39  ;;  %v2229_v31 = vsel %vm948_vm0, %v5395_v28, 0.0 }
 0x79d   :  { %2230 = vadd.xlane.f32.xlu0 %v2229_v31 }
 0x79e   :  { %v5401_v38 = vpop.eup %4246 }
 0x79f   :  { %v5403_v18 = vpop.eup %4248  ;;  %v2238_v23 = vsel %vm948_vm0, %v5401_v38, 0.0 }
 0x7a0   :  { %2239 = vadd.xlane.f32.xlu1 %v2238_v23  ;;  %v2235_v44 = vsel %vm948_vm0, %v5403_v18, 0.0 }
 0x7a1   :  { %v2521_v24 = vpop.xlane.xlu0 %2520  ;;  %2236 = vadd.xlane.f32.xlu0 %v2235_v44 }
 0x7a2   :  { %v2541_v4 = vsub.f32 %v5345_v11, %v2521_v24 }
 0x7a4   :  { %v2550_v62 = vmul.f32 1.442695, %v2541_v4 }
 0x7a5   :  { %v2518_v20 = vpop.xlane.xlu0 %2517 }
 0x7a6   :  { %4250 = vpow2.f32 %v2550_v62  ;;  %v2540_v47 = vsub.f32 %v5347_v61, %v2518_v20 }
 0x7a8   :  { %v2548_v60 = vmul.f32 1.442695, %v2540_v47 }
 0x7a9   :  { %v2524_v55 = vpop.xlane.xlu0 %2523  ;;  %v2533_v16 = vpop.xlane.xlu1 %2532 }
 0x7aa   :  { %4252 = vpow2.f32 %v2548_v60  ;;  %v2542_v7 = vsub.f32 %v5353_v9, %v2524_v55  ;;  %v2545_v37 = vsub.f32 %v5357_v6, %v2533_v16 }
 0x7ac   :  { %v2552_v58 = vmul.f32 1.442695, %v2542_v7  ;;  %v2558_v59 = vmul.f32 1.442695, %v2545_v37 }
 0x7ad   :  { %v2527_v27 = vpop.xlane.xlu0 %2526  ;;  %v2530_v0 = vpop.xlane.xlu1 %2529 }
 0x7ae   :  { %4254 = vpow2.f32 %v2552_v58  ;;  %v2543_v11 = vsub.f32 %v5351_v52, %v2527_v27  ;;  %v2544_v29 = vsub.f32 %v5359_v50, %v2530_v0 }
 0x7af   :  { %4256 = vpow2.f32 %v2558_v59 }
 0x7b0   :  { %v5415_v49 = vpop.eup %4250  ;;  %v2554_v61 = vmul.f32 1.442695, %v2543_v11  ;;  %v2556_v56 = vmul.f32 1.442695, %v2544_v29 }
 0x7b1   :  { %v2536_v42 = vpop.xlane.xlu1 %2535  ;;  %v2567_v9 = vsel %vm948_vm0, %v5415_v49, 0.0 }
 0x7b2   :  { %4258 = vpow2.f32 %v2554_v61  ;;  %v2546_v6 = vsub.f32 %v5367_v48, %v2536_v42  ;;  %2568 = vadd.xlane.f32.xlu0 %v2567_v9 }
 0x7b3   :  { %4260 = vpow2.f32 %v2556_v56 }
 0x7b4   :  { %v5420_v30 = vpop.eup %4252  ;;  %v2560_v36 = vmul.f32 1.442695, %v2546_v6 }
 0x7b5   :  { %v2539_v52 = vpop.xlane.xlu1 %2538  ;;  %v2564_v50 = vsel %vm948_vm0, %v5420_v30, 0.0 }
 0x7b6   :  { %4262 = vpow2.f32 %v2560_v36  ;;  %v2547_v41 = vsub.f32 %v5365_v34, %v2539_v52  ;;  %2565 = vadd.xlane.f32.xlu0 %v2564_v50 }
 0x7b8   :  { %v5425_v57 = vpop.eup %4254  ;;  %v2562_v21 = vmul.f32 1.442695, %v2547_v41 }
 0x7b9   :  { %v5427_v45 = vpop.eup %4256  ;;  %v2570_v48 = vsel %vm948_vm0, %v5425_v57, 0.0 }
 0x7ba   :  { %4264 = vpow2.f32 %v2562_v21  ;;  %2571 = vadd.xlane.f32.xlu0 %v2570_v48  ;;  %v2579_v39 = vsel %vm948_vm0, %v5427_v45, 0.0 }
 0x7bb   :  { %2580 = vadd.xlane.f32.xlu1 %v2579_v39 }
 0x7bc   :  { %v5433_v31 = vpop.eup %4258 }
 0x7bd   :  { %v5435_v23 = vpop.eup %4260  ;;  %v2573_v34 = vsel %vm948_vm0, %v5433_v31, 0.0 }
 0x7be   :  { %2574 = vadd.xlane.f32.xlu0 %v2573_v34  ;;  %v2576_v44 = vsel %vm948_vm0, %v5435_v23, 0.0 }
 0x7bf   :  { %2577 = vadd.xlane.f32.xlu1 %v2576_v44 }
 0x7c0   :  { %v5441_v24 = vpop.eup %4262 }
 0x7c1   :  { %v2582_v4 = vsel %vm948_vm0, %v5441_v24, 0.0 }
 0x7c3   :  { %2583 = vadd.xlane.f32.xlu1 %v2582_v4 }
 0x7c4   :  { %v5445_v62 = vpop.eup %4264 }
 0x7c5   :  { %v2585_v20 = vsel %vm948_vm0, %v5445_v62, 0.0 }
 0x7c7   :  { %2586 = vadd.xlane.f32.xlu1 %v2585_v20 }
 0x821   :  { %v2222_v47 = vpop.xlane.xlu1 %2221 }
 0x822   :  { %4266 = vrcp.f32 %v2222_v47  ;;  %v2219_v60 = vpop.xlane.xlu0 %2218 }
 0x823   :  { %4268 = vrcp.f32 %v2219_v60 }
 0x825   :  { %v2228_v55 = vpop.xlane.xlu1 %2227 }
 0x826   :  { %4270 = vrcp.f32 %v2228_v55  ;;  %v2225_v16 = vpop.xlane.xlu0 %2224 }
 0x827   :  { %4272 = vrcp.f32 %v2225_v16 }
 0x829   :  { %v2234_v7 = vpop.xlane.xlu1 %2233 }
 0x82a   :  { %4274 = vrcp.f32 %v2234_v7  ;;  %v2231_v37 = vpop.xlane.xlu0 %2230 }
 0x82b   :  { %4276 = vrcp.f32 %v2231_v37 }
 0x82c   :  { %v4267_v58 = vpop.eup %4266 }
 0x82d   :  { %v4269_v59 = vpop.eup %4268  ;;  %v2240_v27 = vpop.xlane.xlu1 %2239  ;;  %v2250_v29 = vmul.f32 %v4267_v58, %v5377_v5 }
 0x82e   :  { %4278 = vrcp.f32 %v2240_v27  ;;  %v2237_v0 = vpop.xlane.xlu0 %2236  ;;  %v2249_v11 = vmul.f32 %v4269_v59, %v5379_v26 }
 0x82f   :  { %4280 = vrcp.f32 %v2237_v0 }
 0x830   :  { %v4271_v61 = vpop.eup %4270  ;;  %3735 = vmatprep.mubr.msk.f32.mxu0 %vm948_vm0, %v2249_v11 }
 0x831   :  { %v4273_v56 = vpop.eup %4272  ;;  %3736 = vmatmul.mubr.msk.f32.vlgmr.msra.gmra.mrb[72].mxu0 %vm948_vm0, %v2250_v29  ;;  %v2252_v9 = vmul.f32 %v4271_v61, %v5385_v8 }
 0x832   :  { %4142 = vmatpush3.bf16.msra.mxu0 %v5307_v17  ;;  %v2251_v42 = vmul.f32 %v4273_v56, %v5387_v25 }
 0x833   :  { %4144 = vmatprep.subr.bf16.mxu0 %v5315_v10 }
 0x834   :  { %v4275_v6 = vpop.eup %4274  ;;  %3738 = vmatprep.mubr.msk.f32.mxu0 %vm948_vm0, %v2251_v42 }
 0x835   :  { %v4277_v26 = vpop.eup %4276  ;;  %3739 = vmatmul.mubr.msk.f32.gmra.mrb[74].mxu0 %vm948_vm0, %v2252_v9  ;;  %v2254_v17 = vmul.f32 %v4275_v6, %v5393_v13 }
 0x836   :  { %4146 = vmatpush3.bf16.msra.mxu0 %v5315_v10  ;;  %v2253_v5 = vmul.f32 %v4277_v26, %v5395_v28 }
 0x837   :  { %4148 = vmatprep.subr.bf16.mxu0 %v5323_v32 }
 0x838   :  { %v4279_v36 = vpop.eup %4278  ;;  %3741 = vmatprep.mubr.msk.f32.mxu0 %vm948_vm0, %v2253_v5 }
 0x839   :  { %v4281_v25 = vpop.eup %4280  ;;  %3742 = vmatmul.mubr.msk.f32.gmra.mrb[76].mxu0 %vm948_vm0, %v2254_v17  ;;  %v2256_v10 = vmul.f32 %v4279_v36, %v5401_v38 }
 0x83a   :  { %4150 = vmatpush3.bf16.msra.mxu0 %v5323_v32  ;;  %v2255_v8 = vmul.f32 %v4281_v25, %v5403_v18 }
 0x83b   :  { %4152 = vmatprep.subr.bf16.mxu0 %v5331_v19 }
 0x83c   :  { %3744 = vmatprep.mubr.msk.f32.mxu0 %vm948_vm0, %v2255_v8 }
 0x83d   :  { %3745 = vmatmul.mubr.msk.f32.gmra.mrb[78].mxu0 %vm948_vm0, %v2256_v10 }
 0x83e   :  { %4154 = vmatpush3.bf16.msra.mxu0 %v5331_v19 }
 0x83f   :  { %v2569_v13 = vpop.xlane.xlu0 %2568 }
 0x840   :  { %4282 = vrcp.f32 %v2569_v13 }
 0x843   :  { %v2566_v28 = vpop.xlane.xlu0 %2565 }
 0x844   :  { %4284 = vrcp.f32 %v2566_v28 }
 0x847   :  { %v2572_v52 = vpop.xlane.xlu0 %2571 }
 0x848   :  { %4286 = vrcp.f32 %v2572_v52  ;;  %v2581_v50 = vpop.xlane.xlu1 %2580 }
 0x849   :  { %4288 = vrcp.f32 %v2581_v50 }
 0x84a   :  { %v4283_v41 = vpop.eup %4282 }
 0x84b   :  { %v2575_v32 = vpop.xlane.xlu0 %2574  ;;  %v2597_v48 = vmul.f32 %v4283_v41, %v5415_v49 }
 0x84c   :  { %4290 = vrcp.f32 %v2575_v32  ;;  %v2578_v18 = vpop.xlane.xlu1 %2577 }
 0x84d   :  { %4292 = vrcp.f32 %v2578_v18 }
 0x84e   :  { %v4285_v38 = vpop.eup %4284 }
 0x84f   :  { %v2596_v21 = vmul.f32 %v4285_v38, %v5420_v30 }
 0x850   :  { %v2584_v39 = vpop.xlane.xlu1 %2583 }
 0x851   :  { %4294 = vrcp.f32 %v2584_v39  ;;  %3791 = vmatprep.mubr.msk.f32.mxu0 %vm948_vm0, %v2596_v21 }
 0x852   :  { %v4287_v19 = vpop.eup %4286  ;;  %3792 = vmatmul.mubr.msk.f32.vlgmr.msra.gmra.mrb[80].mxu0 %vm948_vm0, %v2597_v48 }
 0x853   :  { %v2598_v34 = vmul.f32 %v4287_v19, %v5425_v57  ;;  %v4289_v4 = vpop.eup %4288 }
 0x854   :  { %v2587_v44 = vpop.xlane.xlu1 %2586  ;;  %v2601_v60 = vmul.f32 %v4289_v4, %v5427_v45 }
 0x855   :  { %4296 = vrcp.f32 %v2587_v44  ;;  %3794 = vmatprep.mubr.msk.f32.mxu0 %vm948_vm0, %v2598_v34 }
 0x856   :  { %v4291_v20 = vpop.eup %4290 }
 0x857   :  { %v4293_v47 = vpop.eup %4292  ;;  %v2599_v30 = vmul.f32 %v4291_v20, %v5433_v31  ;;  %v2386_v31 = vstv %s2818_s8 }
 0x858   :  { %v2600_v49 = vmul.f32 %v4293_v47, %v5435_v23 }
 0x859   :  { %3795 = vmatmul.mubr.msk.f32.gmra.mrb[82].mxu0 %vm948_vm0, %v2599_v30 }
 0x85a   :  { %3797 = vmatprep.mubr.msk.f32.mxu1 %vm948_vm0, %v2600_v49 }
 0x85b   :  { %v4295_v55 = vpop.eup %4294  ;;  %3798 = vmatmul.mubr.msk.f32.vlgmr.msra.gmra.mrb[88].mxu1 %vm948_vm0, %v2601_v60 }
 0x85c   :  { %v2602_v57 = vmul.f32 %v4295_v55, %v5441_v24 }
 0x85e   :  { %3800 = vmatprep.mubr.msk.f32.mxu1 %vm948_vm0, %v2602_v57 }
 0x85f   :  { %v4297_v16 = vpop.eup %4296 }
 0x860   :  { %v2603_v7 = vmul.f32 %v4297_v16, %v5445_v62 }
 0x862   :  { %3801 = vmatmul.mubr.msk.f32.gmra.mrb[90].mxu1 %vm948_vm0, %v2603_v7 }
 0x904   :  { %v3737_v23 = vpop.f32.mrb[72].mxu0 }
 0x905   :  { %v2388_v45 = vmul.f32 %v3737_v23, %v2386_v31  ;;  %v2347_v37 = vpop.f32.mrb[73].mxu0 }
 0x906   :  { %v2387_v58 = vmul.f32 %v2386_v31, %v2347_v37 }
 0x907   :  { %v2396_v59 = vadd.f32 %v2388_v45, %v5124_v46 }
 0x908   :  { %v2395_v27 = vadd.f32 %v2387_v58, %v5121_v14  ;;  %v3740_v0 = vpop.f32.mrb[74].mxu0 }
 0x909   :  { %2404 = vst [vmem:[#allocation10 + $0x8] sm:$0xff] %v2396_v59  ;;  %v2390_v24 = vmul.f32 %v3740_v0, %v2386_v31  ;;  %v2357_v11 = vpop.f32.mrb[75].mxu0 }
 0x90a   :  { %2403 = vst [vmem:[#allocation10] sm:$0xff] %v2395_v27  ;;  %v2389_v29 = vmul.f32 %v2386_v31, %v2357_v11 }
 0x90b   :  { %v2398_v62 = vadd.f32 %v2390_v24, %v5136_v12 }
 0x90c   :  { %v2397_v61 = vadd.f32 %v2389_v29, %v5133_v35  ;;  %v3743_v56 = vpop.f32.mrb[76].mxu0 }
 0x90d   :  { %2406 = vst [vmem:[#allocation10 + $0x18] sm:$0xff] %v2398_v62  ;;  %v2392_v42 = vmul.f32 %v3743_v56, %v2386_v31  ;;  %v2367_v9 = vpop.f32.mrb[77].mxu0 }
 0x90e   :  { %2405 = vst [vmem:[#allocation10 + $0x10] sm:$0xff] %v2397_v61  ;;  %v2391_v6 = vmul.f32 %v2386_v31, %v2367_v9 }
 0x90f   :  { %v2400_v46 = vadd.f32 %v2392_v42, %v5148_v2 }
 0x910   :  { %v2399_v14 = vadd.f32 %v2391_v6, %v5145_v43  ;;  %v3746_v26 = vpop.f32.mrb[78].mxu0 }
 0x911   :  { %2408 = vst [vmem:[#allocation10 + $0x28] sm:$0xff] %v2400_v46  ;;  %v2394_v5 = vmul.f32 %v3746_v26, %v2386_v31  ;;  %v2377_v17 = vpop.f32.mrb[79].mxu0 }
 0x912   :  { %2407 = vst [vmem:[#allocation10 + $0x20] sm:$0xff] %v2399_v14  ;;  %v2393_v36 = vmul.f32 %v2386_v31, %v2377_v17 }
 0x913   :  { %v2402_v12 = vadd.f32 %v2394_v5, %v5160_v54 }
 0x914   :  { %v2401_v35 = vadd.f32 %v2393_v36, %v5157_v53 }
 0x915   :  { %2410 = vst [vmem:[#allocation10 + $0x38] sm:$0xff] %v2402_v12 }
 0x916   :  { %2409 = vst [vmem:[#allocation10 + $0x30] sm:$0xff] %v2401_v35 }
 0x925   :  { %v3793_v25 = vpop.f32.mrb[80].mxu0 }
 0x926   :  { %v2734_v8 = vmul.f32 %v3793_v25, %v2386_v31  ;;  %v2694_v10 = vpop.f32.mrb[81].mxu0 }
 0x927   :  { %v2733_v13 = vmul.f32 %v2694_v10, %v2386_v31 }
 0x928   :  { %v2742_v2 = vadd.f32 %v2734_v8, %v5172_v33 }
 0x929   :  { %v2741_v43 = vadd.f32 %v2733_v13, %v5169_v51 }
 0x92a   :  { %2750 = vst [vmem:[#allocation10 + $0x48] sm:$0xff] %v2742_v2 }
 0x92b   :  { %2749 = vst [vmem:[#allocation10 + $0x40] sm:$0xff] %v2741_v43 }
 0x92c   :  { %v3796_v28 = vpop.f32.mrb[82].mxu0 }
 0x92d   :  { %v2736_v52 = vmul.f32 %v3796_v28, %v2386_v31  ;;  %v2704_v50 = vpop.f32.mrb[83].mxu0 }
 0x92e   :  { %v2735_v32 = vmul.f32 %v2704_v50, %v2386_v31  ;;  %v3799_v18 = vpop.f32.mrb[88].mxu1 }
 0x92f   :  { %v2744_v54 = vadd.f32 %v2736_v52, %v5184_v15  ;;  %v2738_v53 = vmul.f32 %v3799_v18, %v2386_v31  ;;  %v2714_v41 = vpop.f32.mrb[89].mxu1 }
 0x930   :  { %v2743_v38 = vadd.f32 %v2735_v32, %v5181_v63  ;;  %v2737_v21 = vmul.f32 %v2714_v41, %v2386_v31 }
 0x931   :  { %2752 = vst [vmem:[#allocation10 + $0x58] sm:$0xff] %v2744_v54  ;;  %v2746_v48 = vadd.f32 %v2738_v53, %v5196_v22 }
 0x932   :  { %2751 = vst [vmem:[#allocation10 + $0x50] sm:$0xff] %v2743_v38  ;;  %v2745_v51 = vadd.f32 %v2737_v21, %v5193_v1 }
 0x933   :  { %2754 = vst [vmem:[#allocation10 + $0x68] sm:$0xff] %v2746_v48 }
 0x934   :  { %2753 = vst [vmem:[#allocation10 + $0x60] sm:$0xff] %v2745_v51 }
 0x935   :  { %v3802_v33 = vpop.f32.mrb[90].mxu1 }
 0x936   :  { %v2740_v39 = vmul.f32 %v3802_v33, %v2386_v31  ;;  %v2724_v19 = vpop.f32.mrb[91].mxu1 }
 0x937   :  { %v2739_v34 = vmul.f32 %v2724_v19, %v2386_v31 }
 0x938   :  { %v2748_v15 = vadd.f32 %v2740_v39, %v5208_v40 }
 0x939   :  { %v2747_v44 = vadd.f32 %v2739_v34, %v5205_v3 }
 0x93a   :  { %2756 = vst [vmem:[#allocation10 + $0x78] sm:$0xff] %v2748_v15 }
 0x93b   :  { %2755 = vst [vmem:[#allocation10 + $0x70] sm:$0xff] %v2747_v44 }
 0x93c   :  { %4387 = shalt.err (!%p4384_p5)
}
 0x93d   :  { %s4388_s13 = scalar_lea.hbm %s5529_s10, 2048 }
 0x93e   :  { %p4389_p6 = scmp.ne.s32.totalorder %s5529_s10, %s4388_s13  ;;  %p4392_p7 = scmp.lt.u32.totalorder %s4388_s13, %s5529_s10 }
 0x940   :  { %p4394_p8 = pnand %p4392_p7, %p4389_p6 }
 0x942   :  { %4397 = shalt.err (!%p4394_p8)
}
 0x943   :  { %2768 = dma.vmem_to_hbm [thread:$0]  %s2763_s12, 2048, %s5529_s10, [#allocation4], %s4408_s25, %s4408_s25, %s4409_s26  }
 0x944   :  { %4404 = dma.done.wait [#allocation4], 2048  }
 0x945   :  { %4405 = vsyncadd [#allocation4], 4294965248 }
 0x946   :  { %2772 = vsyncpa [#allocation3], 1 }
 0x947   :  { %2773 = vsyncpa [#allocation7], 1 }
 0x948   :  { %2774 = vsyncpa [#allocation4], 1 }
 0x949   :  { %2775 = vsyncpa [#allocation5], 1 }

</bundles_post_ra>
